<compile_context>
chip_gen: v7x
topology: tpu7x:2x2x1
jax: 0.10.0
libtpu: 0.0.40
codegen_flags: <defaults>
</compile_context>

<pallas_src>
import functools

import jax
import jax.numpy as jnp
from jax.experimental import pallas as pl
from jax.experimental.pallas import tpu as pltpu

# ---- model hyper-parameters (globals in the original script) ----
N_CLASS = 16
EMB_SIZE = 8
N_HIDDEN = 32
SEQ_LEN = 8
BATCH = 2


def _lstm2_kernel(x_ref,      # (seq*B, E)              f32
                  w_ref,      # (E + H + 2H + H, 4H)    f32 packed weight slab
                  b_ref,      # (3, 4H)                 f32 packed bias slab
                  out_ref,    # (B, 4H)  (lane-dense; first n_class cols valid)
                  *, seq, batch):
    E = x_ref.shape[1]
    G = w_ref.shape[1]          # 4*H
    H = G // 4
    B = batch

    # ---- static slices of the packed weight slab (all 8-row aligned) ----
    w1x = w_ref[0:E, :]                       # (E, 4H)   layer-1 input weights
    w1h = w_ref[E:E + H, :]                   # (H, 4H)   layer-1 hidden weights
    w2 = w_ref[E + H:E + 3 * H, :]            # (2H, 4H)  [W2x ; W2h] K-stacked
    wout = w_ref[E + 3 * H:E + 4 * H, :]      # (H, 4H)   output proj (lane-padded)

    b1 = b_ref[0:1, :]                        # (1, 4H)
    b2 = b_ref[1:2, :]                        # (1, 4H)
    bout = b_ref[2:3, :]                      # (1, 4H)   (lane-padded)

    # ---- hoisted input projection for ALL timesteps: one MXU matmul ----
    xw1_all = (jnp.dot(x_ref[...], w1x, preferred_element_type=jnp.float32)
               + b1)                          # (seq*B, 4H)

    zeros = jnp.zeros((B, H), jnp.float32)
    h, c, h1, c1 = zeros, zeros, zeros, zeros

    # seq is a compile-time constant -> fully unrolled, static slices.
    for t in range(seq):
        # ---- layer-1 LSTM cell (1 matmul on the serial chain) ----
        g1 = xw1_all[t * B:(t + 1) * B, :] + jnp.dot(
            h, w1h, preferred_element_type=jnp.float32)           # (B, 4H)
        s1 = jax.nn.sigmoid(g1)                                    # one EUP pass
        t1 = jnp.tanh(g1)                                          # one EUP pass
        c = s1[:, 0 * H:1 * H] * c + s1[:, 1 * H:2 * H] * t1[:, 2 * H:3 * H]
        h = s1[:, 3 * H:4 * H] * jnp.tanh(c)

        # ---- layer-2 LSTM cell: single K-fused matmul over [h | h1] ----
        hh = jnp.concatenate([h, h1], axis=1)                      # (B, 2H)
        g2 = jnp.dot(hh, w2, preferred_element_type=jnp.float32) + b2
        s2 = jax.nn.sigmoid(g2)
        t2 = jnp.tanh(g2)
        c1 = s2[:, 0 * H:1 * H] * c1 + s2[:, 1 * H:2 * H] * t2[:, 2 * H:3 * H]
        h1 = s2[:, 3 * H:4 * H] * jnp.tanh(c1)

    # final projection (lane-dense 128-wide store; wrapper slices to n_class)
    out_ref[...] = (jnp.dot(h1, wout, preferred_element_type=jnp.float32)
                    + bout)


def text_lstm2_forward(tokens, params):
    """tokens: int32 (batch, seq).  Returns logits (batch, n_class) f32."""
    # --- glue (plain JAX): embedding lookup + time-major flatten ---
    emb = params["C"][tokens]                      # (batch, seq, emb)
    x_tbe = jnp.transpose(emb, (1, 0, 2))          # (seq, batch, emb)
    seq, batch, E = x_tbe.shape
    x2d = x_tbe.reshape(seq * batch, E).astype(jnp.float32)

    H = N_HIDDEN
    G = 4 * H

    # --- pack gate weights [f | i | C | o] along the output dim ---
    w1x = jnp.concatenate(
        [params["W_fx"], params["W_ix"], params["W_Cx"], params["W_ox"]], axis=1)
    w1h = jnp.concatenate(
        [params["W_fh"], params["W_ih"], params["W_Ch"], params["W_oh"]], axis=1)
    b1 = jnp.concatenate(
        [params["b_f"], params["b_i"], params["b_C"], params["b_o"]])

    w2x = jnp.concatenate(
        [params["W_fx1"], params["W_ix1"], params["W_Cx1"], params["W_ox1"]], axis=1)
    # reproduce the reference bug: layer-2 i-gate hidden weight is layer-1's W_ih
    w2h = jnp.concatenate(
        [params["W_fh1"], params["W_ih"], params["W_Ch1"], params["W_oh1"]], axis=1)
    b2 = jnp.concatenate(
        [params["b_f1"], params["b_i1"], params["b_C1"], params["b_o1"]])

    n_class = params["W"].shape[1]
    # lane-pad the output projection to 4H=128 lanes (dense store)
    w_out = jnp.zeros((H, G), jnp.float32).at[:, :n_class].set(params["W"])
    b_out = jnp.zeros((G,), jnp.float32).at[:n_class].set(params["b"])

    # --- one weight slab (rows: w1x | w1h | [w2x;w2h] | w_out) + one bias slab
    w_slab = jnp.concatenate([w1x, w1h, w2x, w2h, w_out], axis=0)  # (E+4H, 4H)=(136,128)
    b_slab = jnp.stack([b1, b2, b_out], axis=0)                    # (3, 4H)

    vmem = pl.BlockSpec(memory_space=pltpu.MemorySpace.VMEM)
    kernel = functools.partial(_lstm2_kernel, seq=seq, batch=batch)

    out = pl.pallas_call(
        kernel,
        out_shape=jax.ShapeDtypeStruct((batch, G), jnp.float32),
        in_specs=[vmem, vmem, vmem],
        out_specs=vmem,
    )(x2d, w_slab, b_slab)
    return out[:, :n_class]


def init_params(key):
    """Deterministic synthetic parameters (shapes from TextLSTM2.__init__)."""
    names_shapes = [
        ("C", (N_CLASS, EMB_SIZE)),
        ("W_fx", (EMB_SIZE, N_HIDDEN)), ("W_fh", (N_HIDDEN, N_HIDDEN)),
        ("W_ix", (EMB_SIZE, N_HIDDEN)), ("W_ih", (N_HIDDEN, N_HIDDEN)),
        ("W_Cx", (EMB_SIZE, N_HIDDEN)), ("W_Ch", (N_HIDDEN, N_HIDDEN)),
        ("W_ox", (EMB_SIZE, N_HIDDEN)), ("W_oh", (N_HIDDEN, N_HIDDEN)),
        ("W_fx1", (N_HIDDEN, N_HIDDEN)), ("W_fh1", (N_HIDDEN, N_HIDDEN)),
        ("W_ix1", (N_HIDDEN, N_HIDDEN)), ("W_ih1", (N_HIDDEN, N_HIDDEN)),  # W_ih1 unused in forward (reference bug)
        ("W_Cx1", (N_HIDDEN, N_HIDDEN)), ("W_Ch1", (N_HIDDEN, N_HIDDEN)),
        ("W_ox1", (N_HIDDEN, N_HIDDEN)), ("W_oh1", (N_HIDDEN, N_HIDDEN)),
        ("W", (N_HIDDEN, N_CLASS)),
    ]
    params = {}
    keys = jax.random.split(key, len(names_shapes))
    for k, (name, shape) in zip(keys, names_shapes):
        params[name] = (0.1 * jax.random.normal(k, shape)).astype(jnp.float32)
    # biases initialized to ones, exactly like the reference
    for bname in ["b_f", "b_i", "b_C", "b_o", "b_f1", "b_i1", "b_C1", "b_o1"]:
        params[bname] = jnp.ones((N_HIDDEN,), jnp.float32)
    params["b"] = jnp.ones((N_CLASS,), jnp.float32)
    return params


def _reference_forward(tokens, params):
    """Pure-JAX re-implementation of the PyTorch forward (sanity check)."""
    sig, tanh = jax.nn.sigmoid, jnp.tanh
    X = params["C"][tokens]                     # (batch, seq, emb)
    X = jnp.transpose(X, (1, 0, 2))             # (seq, batch, emb)
    B = X.shape[1]
    h_t = jnp.zeros((B, N_HIDDEN), jnp.float32)
    C_t = h_t
    outputs = []
    for t in range(X.shape[0]):
        x = X[t]
        f_t = sig(x @ params["W_fx"] + h_t @ params["W_fh"] + params["b_f"])
        i_t = sig(x @ params["W_ix"] + h_t @ params["W_ih"] + params["b_i"])
        C_th = tanh(x @ params["W_Cx"] + h_t @ params["W_Ch"] + params["b_C"])
        C_t = f_t * C_t + i_t * C_th
        o_t = sig(x @ params["W_ox"] + h_t @ params["W_oh"] + params["b_o"])
        h_t = o_t * tanh(C_t)
        outputs.append(h_t)
    h_t1 = jnp.zeros((B, N_HIDDEN), jnp.float32)
    C_t1 = h_t1
    for h in outputs:
        f_t1 = sig(h @ params["W_fx1"] + h_t1 @ params["W_fh1"] + params["b_f1"])
        i_t1 = sig(h @ params["W_ix1"] + h_t1 @ params["W_ih"] + params["b_i1"])  # ref bug: W_ih
        C_th1 = tanh(h @ params["W_Cx1"] + h_t1 @ params["W_Ch1"] + params["b_C1"])
        C_t1 = f_t1 * C_t1 + i_t1 * C_th1
        o_t1 = sig(h @ params["W_ox1"] + h_t1 @ params["W_oh1"] + params["b_o1"])
        h_t1 = o_t1 * tanh(C_t1)
    return h_t1 @ params["W"] + params["b"]


if __name__ == "__main__":
    key = jax.random.PRNGKey(0)
    pkey, tkey = jax.random.split(key)
    params = init_params(pkey)
    tokens = jax.random.randint(tkey, (BATCH, SEQ_LEN), 0, N_CLASS, dtype=jnp.int32)

    out = text_lstm2_forward(tokens, params)
    out = jax.block_until_ready(out)

    ref = jax.block_until_ready(_reference_forward(tokens, params))
    assert out.shape == (BATCH, N_CLASS)
    assert jnp.allclose(out, ref, atol=1e-5, rtol=1e-5)

    print("KERNEL_OK")
</pallas_src>

<mosaic_0001>
module attributes {stable_mosaic.version = 11 : i64} {
  func.func @_lstm2_kernel(%arg0: memref<16x8xf32, #tpu.memory_space<vmem>>, %arg1: memref<136x128xf32, #tpu.memory_space<vmem>>, %arg2: memref<3x128xf32, #tpu.memory_space<vmem>>, %arg3: memref<2x128xf32, #tpu.memory_space<vmem>>) attributes {dimension_semantics = [], scalar_prefetch = 0 : i64, scratch_operands = 0 : i64, tpu.core_type = #tpu.core_type<tc>} {
    %c0 = arith.constant 0 : index
    %c0_0 = arith.constant 0 : index
    %0 = vector.load %arg1[%c0, %c0_0] : memref<136x128xf32, #tpu.memory_space<vmem>>, vector<8x128xf32>
    %c8 = arith.constant 8 : index
    %c0_1 = arith.constant 0 : index
    %1 = vector.load %arg1[%c8, %c0_1] : memref<136x128xf32, #tpu.memory_space<vmem>>, vector<32x128xf32>
    %c40 = arith.constant 40 : index
    %c0_2 = arith.constant 0 : index
    %2 = vector.load %arg1[%c40, %c0_2] : memref<136x128xf32, #tpu.memory_space<vmem>>, vector<64x128xf32>
    %c104 = arith.constant 104 : index
    %c0_3 = arith.constant 0 : index
    %3 = vector.load %arg1[%c104, %c0_3] : memref<136x128xf32, #tpu.memory_space<vmem>>, vector<32x128xf32>
    %c0_4 = arith.constant 0 : index
    %c0_5 = arith.constant 0 : index
    %4 = vector.load %arg2[%c0_4, %c0_5] : memref<3x128xf32, #tpu.memory_space<vmem>>, vector<1x128xf32>
    %c1 = arith.constant 1 : index
    %c0_6 = arith.constant 0 : index
    %5 = vector.load %arg2[%c1, %c0_6] : memref<3x128xf32, #tpu.memory_space<vmem>>, vector<1x128xf32>
    %c2 = arith.constant 2 : index
    %c0_7 = arith.constant 0 : index
    %6 = vector.load %arg2[%c2, %c0_7] : memref<3x128xf32, #tpu.memory_space<vmem>>, vector<1x128xf32>
    %c0_8 = arith.constant 0 : index
    %c0_9 = arith.constant 0 : index
    %7 = vector.load %arg0[%c0_8, %c0_9] : memref<16x8xf32, #tpu.memory_space<vmem>>, vector<16x8xf32>
    %cst = arith.constant dense<0.000000e+00> : vector<16x128xf32>
    %8 = tpu.matmul %7, %0, %cst {dimension_numbers = #tpu.dot_dimension_numbers<[1], [0], [0], [1], [0, 0, 1, 1], [], []>} : vector<16x8xf32>, vector<8x128xf32>, vector<16x128xf32> -> vector<16x128xf32>
    %9 = vector.broadcast %4 : vector<1x128xf32> to vector<16x128xf32>
    %10 = arith.addf %8, %9 : vector<16x128xf32>
    %cst_10 = arith.constant 0.000000e+00 : f32
    %11 = vector.broadcast %cst_10 : f32 to vector<2x32xf32>
    %12 = vector.extract_strided_slice %10 {offsets = [0, 0], sizes = [2, 128], strides = [1, 1]} : vector<16x128xf32> to vector<2x128xf32>
    %cst_11 = arith.constant dense<0.000000e+00> : vector<2x128xf32>
    %13 = tpu.matmul %11, %1, %cst_11 {dimension_numbers = #tpu.dot_dimension_numbers<[1], [0], [0], [1], [0, 0, 1, 1], [], []>} : vector<2x32xf32>, vector<32x128xf32>, vector<2x128xf32> -> vector<2x128xf32>
    %14 = arith.addf %12, %13 : vector<2x128xf32>
    %15 = arith.negf %14 : vector<2x128xf32>
    %16 = math.exp %15 : vector<2x128xf32>
    %cst_12 = arith.constant 1.000000e+00 : f32
    %17 = vector.broadcast %cst_12 : f32 to vector<2x128xf32>
    %18 = arith.addf %17, %16 : vector<2x128xf32>
    %19 = arith.divf %17, %18 : vector<2x128xf32>
    %20 = math.tanh %14 : vector<2x128xf32>
    %21 = vector.extract_strided_slice %19 {offsets = [0, 0], sizes = [2, 32], strides = [1, 1]} : vector<2x128xf32> to vector<2x32xf32>
    %22 = arith.mulf %21, %11 : vector<2x32xf32>
    %23 = vector.extract_strided_slice %19 {offsets = [0, 32], sizes = [2, 32], strides = [1, 1]} : vector<2x128xf32> to vector<2x32xf32>
    %24 = vector.extract_strided_slice %20 {offsets = [0, 64], sizes = [2, 32], strides = [1, 1]} : vector<2x128xf32> to vector<2x32xf32>
    %25 = arith.mulf %23, %24 : vector<2x32xf32>
    %26 = arith.addf %22, %25 : vector<2x32xf32>
    %27 = vector.extract_strided_slice %19 {offsets = [0, 96], sizes = [2, 32], strides = [1, 1]} : vector<2x128xf32> to vector<2x32xf32>
    %28 = math.tanh %26 : vector<2x32xf32>
    %29 = arith.mulf %27, %28 : vector<2x32xf32>
    %30 = tpu.concatenate %29, %11 in 1 : vector<2x32xf32>, vector<2x32xf32> -> vector<2x64xf32>
    %cst_13 = arith.constant dense<0.000000e+00> : vector<2x128xf32>
    %31 = tpu.matmul %30, %2, %cst_13 {dimension_numbers = #tpu.dot_dimension_numbers<[1], [0], [0], [1], [0, 0, 1, 1], [], []>} : vector<2x64xf32>, vector<64x128xf32>, vector<2x128xf32> -> vector<2x128xf32>
    %32 = vector.broadcast %5 : vector<1x128xf32> to vector<2x128xf32>
    %33 = arith.addf %31, %32 : vector<2x128xf32>
    %34 = arith.negf %33 : vector<2x128xf32>
    %35 = math.exp %34 : vector<2x128xf32>
    %cst_14 = arith.constant 1.000000e+00 : f32
    %36 = vector.broadcast %cst_14 : f32 to vector<2x128xf32>
    %37 = arith.addf %36, %35 : vector<2x128xf32>
    %38 = arith.divf %36, %37 : vector<2x128xf32>
    %39 = math.tanh %33 : vector<2x128xf32>
    %40 = vector.extract_strided_slice %38 {offsets = [0, 0], sizes = [2, 32], strides = [1, 1]} : vector<2x128xf32> to vector<2x32xf32>
    %41 = arith.mulf %40, %11 : vector<2x32xf32>
    %42 = vector.extract_strided_slice %38 {offsets = [0, 32], sizes = [2, 32], strides = [1, 1]} : vector<2x128xf32> to vector<2x32xf32>
    %43 = vector.extract_strided_slice %39 {offsets = [0, 64], sizes = [2, 32], strides = [1, 1]} : vector<2x128xf32> to vector<2x32xf32>
    %44 = arith.mulf %42, %43 : vector<2x32xf32>
    %45 = arith.addf %41, %44 : vector<2x32xf32>
    %46 = vector.extract_strided_slice %38 {offsets = [0, 96], sizes = [2, 32], strides = [1, 1]} : vector<2x128xf32> to vector<2x32xf32>
    %47 = math.tanh %45 : vector<2x32xf32>
    %48 = arith.mulf %46, %47 : vector<2x32xf32>
    %49 = vector.extract_strided_slice %10 {offsets = [2, 0], sizes = [2, 128], strides = [1, 1]} : vector<16x128xf32> to vector<2x128xf32>
    %cst_15 = arith.constant dense<0.000000e+00> : vector<2x128xf32>
    %50 = tpu.matmul %29, %1, %cst_15 {dimension_numbers = #tpu.dot_dimension_numbers<[1], [0], [0], [1], [0, 0, 1, 1], [], []>} : vector<2x32xf32>, vector<32x128xf32>, vector<2x128xf32> -> vector<2x128xf32>
    %51 = arith.addf %49, %50 : vector<2x128xf32>
    %52 = arith.negf %51 : vector<2x128xf32>
    %53 = math.exp %52 : vector<2x128xf32>
    %cst_16 = arith.constant 1.000000e+00 : f32
    %54 = vector.broadcast %cst_16 : f32 to vector<2x128xf32>
    %55 = arith.addf %54, %53 : vector<2x128xf32>
    %56 = arith.divf %54, %55 : vector<2x128xf32>
    %57 = math.tanh %51 : vector<2x128xf32>
    %58 = vector.extract_strided_slice %56 {offsets = [0, 0], sizes = [2, 32], strides = [1, 1]} : vector<2x128xf32> to vector<2x32xf32>
    %59 = arith.mulf %58, %26 : vector<2x32xf32>
    %60 = vector.extract_strided_slice %56 {offsets = [0, 32], sizes = [2, 32], strides = [1, 1]} : vector<2x128xf32> to vector<2x32xf32>
    %61 = vector.extract_strided_slice %57 {offsets = [0, 64], sizes = [2, 32], strides = [1, 1]} : vector<2x128xf32> to vector<2x32xf32>
    %62 = arith.mulf %60, %61 : vector<2x32xf32>
    %63 = arith.addf %59, %62 : vector<2x32xf32>
    %64 = vector.extract_strided_slice %56 {offsets = [0, 96], sizes = [2, 32], strides = [1, 1]} : vector<2x128xf32> to vector<2x32xf32>
    %65 = math.tanh %63 : vector<2x32xf32>
    %66 = arith.mulf %64, %65 : vector<2x32xf32>
    %67 = tpu.concatenate %66, %48 in 1 : vector<2x32xf32>, vector<2x32xf32> -> vector<2x64xf32>
    %cst_17 = arith.constant dense<0.000000e+00> : vector<2x128xf32>
    %68 = tpu.matmul %67, %2, %cst_17 {dimension_numbers = #tpu.dot_dimension_numbers<[1], [0], [0], [1], [0, 0, 1, 1], [], []>} : vector<2x64xf32>, vector<64x128xf32>, vector<2x128xf32> -> vector<2x128xf32>
    %69 = vector.broadcast %5 : vector<1x128xf32> to vector<2x128xf32>
    %70 = arith.addf %68, %69 : vector<2x128xf32>
    %71 = arith.negf %70 : vector<2x128xf32>
    %72 = math.exp %71 : vector<2x128xf32>
    %cst_18 = arith.constant 1.000000e+00 : f32
    %73 = vector.broadcast %cst_18 : f32 to vector<2x128xf32>
    %74 = arith.addf %73, %72 : vector<2x128xf32>
    %75 = arith.divf %73, %74 : vector<2x128xf32>
    %76 = math.tanh %70 : vector<2x128xf32>
    %77 = vector.extract_strided_slice %75 {offsets = [0, 0], sizes = [2, 32], strides = [1, 1]} : vector<2x128xf32> to vector<2x32xf32>
    %78 = arith.mulf %77, %45 : vector<2x32xf32>
    %79 = vector.extract_strided_slice %75 {offsets = [0, 32], sizes = [2, 32], strides = [1, 1]} : vector<2x128xf32> to vector<2x32xf32>
    %80 = vector.extract_strided_slice %76 {offsets = [0, 64], sizes = [2, 32], strides = [1, 1]} : vector<2x128xf32> to vector<2x32xf32>
    %81 = arith.mulf %79, %80 : vector<2x32xf32>
    %82 = arith.addf %78, %81 : vector<2x32xf32>
    %83 = vector.extract_strided_slice %75 {offsets = [0, 96], sizes = [2, 32], strides = [1, 1]} : vector<2x128xf32> to vector<2x32xf32>
    %84 = math.tanh %82 : vector<2x32xf32>
    %85 = arith.mulf %83, %84 : vector<2x32xf32>
    %86 = vector.extract_strided_slice %10 {offsets = [4, 0], sizes = [2, 128], strides = [1, 1]} : vector<16x128xf32> to vector<2x128xf32>
    %cst_19 = arith.constant dense<0.000000e+00> : vector<2x128xf32>
    %87 = tpu.matmul %66, %1, %cst_19 {dimension_numbers = #tpu.dot_dimension_numbers<[1], [0], [0], [1], [0, 0, 1, 1], [], []>} : vector<2x32xf32>, vector<32x128xf32>, vector<2x128xf32> -> vector<2x128xf32>
    %88 = arith.addf %86, %87 : vector<2x128xf32>
    %89 = arith.negf %88 : vector<2x128xf32>
    %90 = math.exp %89 : vector<2x128xf32>
    %cst_20 = arith.constant 1.000000e+00 : f32
    %91 = vector.broadcast %cst_20 : f32 to vector<2x128xf32>
    %92 = arith.addf %91, %90 : vector<2x128xf32>
    %93 = arith.divf %91, %92 : vector<2x128xf32>
    %94 = math.tanh %88 : vector<2x128xf32>
    %95 = vector.extract_strided_slice %93 {offsets = [0, 0], sizes = [2, 32], strides = [1, 1]} : vector<2x128xf32> to vector<2x32xf32>
    %96 = arith.mulf %95, %63 : vector<2x32xf32>
    %97 = vector.extract_strided_slice %93 {offsets = [0, 32], sizes = [2, 32], strides = [1, 1]} : vector<2x128xf32> to vector<2x32xf32>
    %98 = vector.extract_strided_slice %94 {offsets = [0, 64], sizes = [2, 32], strides = [1, 1]} : vector<2x128xf32> to vector<2x32xf32>
    %99 = arith.mulf %97, %98 : vector<2x32xf32>
    %100 = arith.addf %96, %99 : vector<2x32xf32>
    %101 = vector.extract_strided_slice %93 {offsets = [0, 96], sizes = [2, 32], strides = [1, 1]} : vector<2x128xf32> to vector<2x32xf32>
    %102 = math.tanh %100 : vector<2x32xf32>
    %103 = arith.mulf %101, %102 : vector<2x32xf32>
    %104 = tpu.concatenate %103, %85 in 1 : vector<2x32xf32>, vector<2x32xf32> -> vector<2x64xf32>
    %cst_21 = arith.constant dense<0.000000e+00> : vector<2x128xf32>
    %105 = tpu.matmul %104, %2, %cst_21 {dimension_numbers = #tpu.dot_dimension_numbers<[1], [0], [0], [1], [0, 0, 1, 1], [], []>} : vector<2x64xf32>, vector<64x128xf32>, vector<2x128xf32> -> vector<2x128xf32>
    %106 = vector.broadcast %5 : vector<1x128xf32> to vector<2x128xf32>
    %107 = arith.addf %105, %106 : vector<2x128xf32>
    %108 = arith.negf %107 : vector<2x128xf32>
    %109 = math.exp %108 : vector<2x128xf32>
    %cst_22 = arith.constant 1.000000e+00 : f32
    %110 = vector.broadcast %cst_22 : f32 to vector<2x128xf32>
    %111 = arith.addf %110, %109 : vector<2x128xf32>
    %112 = arith.divf %110, %111 : vector<2x128xf32>
    %113 = math.tanh %107 : vector<2x128xf32>
    %114 = vector.extract_strided_slice %112 {offsets = [0, 0], sizes = [2, 32], strides = [1, 1]} : vector<2x128xf32> to vector<2x32xf32>
    %115 = arith.mulf %114, %82 : vector<2x32xf32>
    %116 = vector.extract_strided_slice %112 {offsets = [0, 32], sizes = [2, 32], strides = [1, 1]} : vector<2x128xf32> to vector<2x32xf32>
    %117 = vector.extract_strided_slice %113 {offsets = [0, 64], sizes = [2, 32], strides = [1, 1]} : vector<2x128xf32> to vector<2x32xf32>
    %118 = arith.mulf %116, %117 : vector<2x32xf32>
    %119 = arith.addf %115, %118 : vector<2x32xf32>
    %120 = vector.extract_strided_slice %112 {offsets = [0, 96], sizes = [2, 32], strides = [1, 1]} : vector<2x128xf32> to vector<2x32xf32>
    %121 = math.tanh %119 : vector<2x32xf32>
    %122 = arith.mulf %120, %121 : vector<2x32xf32>
    %123 = vector.extract_strided_slice %10 {offsets = [6, 0], sizes = [2, 128], strides = [1, 1]} : vector<16x128xf32> to vector<2x128xf32>
    %cst_23 = arith.constant dense<0.000000e+00> : vector<2x128xf32>
    %124 = tpu.matmul %103, %1, %cst_23 {dimension_numbers = #tpu.dot_dimension_numbers<[1], [0], [0], [1], [0, 0, 1, 1], [], []>} : vector<2x32xf32>, vector<32x128xf32>, vector<2x128xf32> -> vector<2x128xf32>
    %125 = arith.addf %123, %124 : vector<2x128xf32>
    %126 = arith.negf %125 : vector<2x128xf32>
    %127 = math.exp %126 : vector<2x128xf32>
    %cst_24 = arith.constant 1.000000e+00 : f32
    %128 = vector.broadcast %cst_24 : f32 to vector<2x128xf32>
    %129 = arith.addf %128, %127 : vector<2x128xf32>
    %130 = arith.divf %128, %129 : vector<2x128xf32>
    %131 = math.tanh %125 : vector<2x128xf32>
    %132 = vector.extract_strided_slice %130 {offsets = [0, 0], sizes = [2, 32], strides = [1, 1]} : vector<2x128xf32> to vector<2x32xf32>
    %133 = arith.mulf %132, %100 : vector<2x32xf32>
    %134 = vector.extract_strided_slice %130 {offsets = [0, 32], sizes = [2, 32], strides = [1, 1]} : vector<2x128xf32> to vector<2x32xf32>
    %135 = vector.extract_strided_slice %131 {offsets = [0, 64], sizes = [2, 32], strides = [1, 1]} : vector<2x128xf32> to vector<2x32xf32>
    %136 = arith.mulf %134, %135 : vector<2x32xf32>
    %137 = arith.addf %133, %136 : vector<2x32xf32>
    %138 = vector.extract_strided_slice %130 {offsets = [0, 96], sizes = [2, 32], strides = [1, 1]} : vector<2x128xf32> to vector<2x32xf32>
    %139 = math.tanh %137 : vector<2x32xf32>
    %140 = arith.mulf %138, %139 : vector<2x32xf32>
    %141 = tpu.concatenate %140, %122 in 1 : vector<2x32xf32>, vector<2x32xf32> -> vector<2x64xf32>
    %cst_25 = arith.constant dense<0.000000e+00> : vector<2x128xf32>
    %142 = tpu.matmul %141, %2, %cst_25 {dimension_numbers = #tpu.dot_dimension_numbers<[1], [0], [0], [1], [0, 0, 1, 1], [], []>} : vector<2x64xf32>, vector<64x128xf32>, vector<2x128xf32> -> vector<2x128xf32>
    %143 = vector.broadcast %5 : vector<1x128xf32> to vector<2x128xf32>
    %144 = arith.addf %142, %143 : vector<2x128xf32>
    %145 = arith.negf %144 : vector<2x128xf32>
    %146 = math.exp %145 : vector<2x128xf32>
    %cst_26 = arith.constant 1.000000e+00 : f32
    %147 = vector.broadcast %cst_26 : f32 to vector<2x128xf32>
    %148 = arith.addf %147, %146 : vector<2x128xf32>
    %149 = arith.divf %147, %148 : vector<2x128xf32>
    %150 = math.tanh %144 : vector<2x128xf32>
    %151 = vector.extract_strided_slice %149 {offsets = [0, 0], sizes = [2, 32], strides = [1, 1]} : vector<2x128xf32> to vector<2x32xf32>
    %152 = arith.mulf %151, %119 : vector<2x32xf32>
    %153 = vector.extract_strided_slice %149 {offsets = [0, 32], sizes = [2, 32], strides = [1, 1]} : vector<2x128xf32> to vector<2x32xf32>
    %154 = vector.extract_strided_slice %150 {offsets = [0, 64], sizes = [2, 32], strides = [1, 1]} : vector<2x128xf32> to vector<2x32xf32>
    %155 = arith.mulf %153, %154 : vector<2x32xf32>
    %156 = arith.addf %152, %155 : vector<2x32xf32>
    %157 = vector.extract_strided_slice %149 {offsets = [0, 96], sizes = [2, 32], strides = [1, 1]} : vector<2x128xf32> to vector<2x32xf32>
    %158 = math.tanh %156 : vector<2x32xf32>
    %159 = arith.mulf %157, %158 : vector<2x32xf32>
    %160 = vector.extract_strided_slice %10 {offsets = [8, 0], sizes = [2, 128], strides = [1, 1]} : vector<16x128xf32> to vector<2x128xf32>
    %cst_27 = arith.constant dense<0.000000e+00> : vector<2x128xf32>
    %161 = tpu.matmul %140, %1, %cst_27 {dimension_numbers = #tpu.dot_dimension_numbers<[1], [0], [0], [1], [0, 0, 1, 1], [], []>} : vector<2x32xf32>, vector<32x128xf32>, vector<2x128xf32> -> vector<2x128xf32>
    %162 = arith.addf %160, %161 : vector<2x128xf32>
    %163 = arith.negf %162 : vector<2x128xf32>
    %164 = math.exp %163 : vector<2x128xf32>
    %cst_28 = arith.constant 1.000000e+00 : f32
    %165 = vector.broadcast %cst_28 : f32 to vector<2x128xf32>
    %166 = arith.addf %165, %164 : vector<2x128xf32>
    %167 = arith.divf %165, %166 : vector<2x128xf32>
    %168 = math.tanh %162 : vector<2x128xf32>
    %169 = vector.extract_strided_slice %167 {offsets = [0, 0], sizes = [2, 32], strides = [1, 1]} : vector<2x128xf32> to vector<2x32xf32>
    %170 = arith.mulf %169, %137 : vector<2x32xf32>
    %171 = vector.extract_strided_slice %167 {offsets = [0, 32], sizes = [2, 32], strides = [1, 1]} : vector<2x128xf32> to vector<2x32xf32>
    %172 = vector.extract_strided_slice %168 {offsets = [0, 64], sizes = [2, 32], strides = [1, 1]} : vector<2x128xf32> to vector<2x32xf32>
    %173 = arith.mulf %171, %172 : vector<2x32xf32>
    %174 = arith.addf %170, %173 : vector<2x32xf32>
    %175 = vector.extract_strided_slice %167 {offsets = [0, 96], sizes = [2, 32], strides = [1, 1]} : vector<2x128xf32> to vector<2x32xf32>
    %176 = math.tanh %174 : vector<2x32xf32>
    %177 = arith.mulf %175, %176 : vector<2x32xf32>
    %178 = tpu.concatenate %177, %159 in 1 : vector<2x32xf32>, vector<2x32xf32> -> vector<2x64xf32>
    %cst_29 = arith.constant dense<0.000000e+00> : vector<2x128xf32>
    %179 = tpu.matmul %178, %2, %cst_29 {dimension_numbers = #tpu.dot_dimension_numbers<[1], [0], [0], [1], [0, 0, 1, 1], [], []>} : vector<2x64xf32>, vector<64x128xf32>, vector<2x128xf32> -> vector<2x128xf32>
    %180 = vector.broadcast %5 : vector<1x128xf32> to vector<2x128xf32>
    %181 = arith.addf %179, %180 : vector<2x128xf32>
    %182 = arith.negf %181 : vector<2x128xf32>
    %183 = math.exp %182 : vector<2x128xf32>
    %cst_30 = arith.constant 1.000000e+00 : f32
    %184 = vector.broadcast %cst_30 : f32 to vector<2x128xf32>
    %185 = arith.addf %184, %183 : vector<2x128xf32>
    %186 = arith.divf %184, %185 : vector<2x128xf32>
    %187 = math.tanh %181 : vector<2x128xf32>
    %188 = vector.extract_strided_slice %186 {offsets = [0, 0], sizes = [2, 32], strides = [1, 1]} : vector<2x128xf32> to vector<2x32xf32>
    %189 = arith.mulf %188, %156 : vector<2x32xf32>
    %190 = vector.extract_strided_slice %186 {offsets = [0, 32], sizes = [2, 32], strides = [1, 1]} : vector<2x128xf32> to vector<2x32xf32>
    %191 = vector.extract_strided_slice %187 {offsets = [0, 64], sizes = [2, 32], strides = [1, 1]} : vector<2x128xf32> to vector<2x32xf32>
    %192 = arith.mulf %190, %191 : vector<2x32xf32>
    %193 = arith.addf %189, %192 : vector<2x32xf32>
    %194 = vector.extract_strided_slice %186 {offsets = [0, 96], sizes = [2, 32], strides = [1, 1]} : vector<2x128xf32> to vector<2x32xf32>
    %195 = math.tanh %193 : vector<2x32xf32>
    %196 = arith.mulf %194, %195 : vector<2x32xf32>
    %197 = vector.extract_strided_slice %10 {offsets = [10, 0], sizes = [2, 128], strides = [1, 1]} : vector<16x128xf32> to vector<2x128xf32>
    %cst_31 = arith.constant dense<0.000000e+00> : vector<2x128xf32>
    %198 = tpu.matmul %177, %1, %cst_31 {dimension_numbers = #tpu.dot_dimension_numbers<[1], [0], [0], [1], [0, 0, 1, 1], [], []>} : vector<2x32xf32>, vector<32x128xf32>, vector<2x128xf32> -> vector<2x128xf32>
    %199 = arith.addf %197, %198 : vector<2x128xf32>
    %200 = arith.negf %199 : vector<2x128xf32>
    %201 = math.exp %200 : vector<2x128xf32>
    %cst_32 = arith.constant 1.000000e+00 : f32
    %202 = vector.broadcast %cst_32 : f32 to vector<2x128xf32>
    %203 = arith.addf %202, %201 : vector<2x128xf32>
    %204 = arith.divf %202, %203 : vector<2x128xf32>
    %205 = math.tanh %199 : vector<2x128xf32>
    %206 = vector.extract_strided_slice %204 {offsets = [0, 0], sizes = [2, 32], strides = [1, 1]} : vector<2x128xf32> to vector<2x32xf32>
    %207 = arith.mulf %206, %174 : vector<2x32xf32>
    %208 = vector.extract_strided_slice %204 {offsets = [0, 32], sizes = [2, 32], strides = [1, 1]} : vector<2x128xf32> to vector<2x32xf32>
    %209 = vector.extract_strided_slice %205 {offsets = [0, 64], sizes = [2, 32], strides = [1, 1]} : vector<2x128xf32> to vector<2x32xf32>
    %210 = arith.mulf %208, %209 : vector<2x32xf32>
    %211 = arith.addf %207, %210 : vector<2x32xf32>
    %212 = vector.extract_strided_slice %204 {offsets = [0, 96], sizes = [2, 32], strides = [1, 1]} : vector<2x128xf32> to vector<2x32xf32>
    %213 = math.tanh %211 : vector<2x32xf32>
    %214 = arith.mulf %212, %213 : vector<2x32xf32>
    %215 = tpu.concatenate %214, %196 in 1 : vector<2x32xf32>, vector<2x32xf32> -> vector<2x64xf32>
    %cst_33 = arith.constant dense<0.000000e+00> : vector<2x128xf32>
    %216 = tpu.matmul %215, %2, %cst_33 {dimension_numbers = #tpu.dot_dimension_numbers<[1], [0], [0], [1], [0, 0, 1, 1], [], []>} : vector<2x64xf32>, vector<64x128xf32>, vector<2x128xf32> -> vector<2x128xf32>
    %217 = vector.broadcast %5 : vector<1x128xf32> to vector<2x128xf32>
    %218 = arith.addf %216, %217 : vector<2x128xf32>
    %219 = arith.negf %218 : vector<2x128xf32>
    %220 = math.exp %219 : vector<2x128xf32>
    %cst_34 = arith.constant 1.000000e+00 : f32
    %221 = vector.broadcast %cst_34 : f32 to vector<2x128xf32>
    %222 = arith.addf %221, %220 : vector<2x128xf32>
    %223 = arith.divf %221, %222 : vector<2x128xf32>
    %224 = math.tanh %218 : vector<2x128xf32>
    %225 = vector.extract_strided_slice %223 {offsets = [0, 0], sizes = [2, 32], strides = [1, 1]} : vector<2x128xf32> to vector<2x32xf32>
    %226 = arith.mulf %225, %193 : vector<2x32xf32>
    %227 = vector.extract_strided_slice %223 {offsets = [0, 32], sizes = [2, 32], strides = [1, 1]} : vector<2x128xf32> to vector<2x32xf32>
    %228 = vector.extract_strided_slice %224 {offsets = [0, 64], sizes = [2, 32], strides = [1, 1]} : vector<2x128xf32> to vector<2x32xf32>
    %229 = arith.mulf %227, %228 : vector<2x32xf32>
    %230 = arith.addf %226, %229 : vector<2x32xf32>
    %231 = vector.extract_strided_slice %223 {offsets = [0, 96], sizes = [2, 32], strides = [1, 1]} : vector<2x128xf32> to vector<2x32xf32>
    %232 = math.tanh %230 : vector<2x32xf32>
    %233 = arith.mulf %231, %232 : vector<2x32xf32>
    %234 = vector.extract_strided_slice %10 {offsets = [12, 0], sizes = [2, 128], strides = [1, 1]} : vector<16x128xf32> to vector<2x128xf32>
    %cst_35 = arith.constant dense<0.000000e+00> : vector<2x128xf32>
    %235 = tpu.matmul %214, %1, %cst_35 {dimension_numbers = #tpu.dot_dimension_numbers<[1], [0], [0], [1], [0, 0, 1, 1], [], []>} : vector<2x32xf32>, vector<32x128xf32>, vector<2x128xf32> -> vector<2x128xf32>
    %236 = arith.addf %234, %235 : vector<2x128xf32>
    %237 = arith.negf %236 : vector<2x128xf32>
    %238 = math.exp %237 : vector<2x128xf32>
    %cst_36 = arith.constant 1.000000e+00 : f32
    %239 = vector.broadcast %cst_36 : f32 to vector<2x128xf32>
    %240 = arith.addf %239, %238 : vector<2x128xf32>
    %241 = arith.divf %239, %240 : vector<2x128xf32>
    %242 = math.tanh %236 : vector<2x128xf32>
    %243 = vector.extract_strided_slice %241 {offsets = [0, 0], sizes = [2, 32], strides = [1, 1]} : vector<2x128xf32> to vector<2x32xf32>
    %244 = arith.mulf %243, %211 : vector<2x32xf32>
    %245 = vector.extract_strided_slice %241 {offsets = [0, 32], sizes = [2, 32], strides = [1, 1]} : vector<2x128xf32> to vector<2x32xf32>
    %246 = vector.extract_strided_slice %242 {offsets = [0, 64], sizes = [2, 32], strides = [1, 1]} : vector<2x128xf32> to vector<2x32xf32>
    %247 = arith.mulf %245, %246 : vector<2x32xf32>
    %248 = arith.addf %244, %247 : vector<2x32xf32>
    %249 = vector.extract_strided_slice %241 {offsets = [0, 96], sizes = [2, 32], strides = [1, 1]} : vector<2x128xf32> to vector<2x32xf32>
    %250 = math.tanh %248 : vector<2x32xf32>
    %251 = arith.mulf %249, %250 : vector<2x32xf32>
    %252 = tpu.concatenate %251, %233 in 1 : vector<2x32xf32>, vector<2x32xf32> -> vector<2x64xf32>
    %cst_37 = arith.constant dense<0.000000e+00> : vector<2x128xf32>
    %253 = tpu.matmul %252, %2, %cst_37 {dimension_numbers = #tpu.dot_dimension_numbers<[1], [0], [0], [1], [0, 0, 1, 1], [], []>} : vector<2x64xf32>, vector<64x128xf32>, vector<2x128xf32> -> vector<2x128xf32>
    %254 = vector.broadcast %5 : vector<1x128xf32> to vector<2x128xf32>
    %255 = arith.addf %253, %254 : vector<2x128xf32>
    %256 = arith.negf %255 : vector<2x128xf32>
    %257 = math.exp %256 : vector<2x128xf32>
    %cst_38 = arith.constant 1.000000e+00 : f32
    %258 = vector.broadcast %cst_38 : f32 to vector<2x128xf32>
    %259 = arith.addf %258, %257 : vector<2x128xf32>
    %260 = arith.divf %258, %259 : vector<2x128xf32>
    %261 = math.tanh %255 : vector<2x128xf32>
    %262 = vector.extract_strided_slice %260 {offsets = [0, 0], sizes = [2, 32], strides = [1, 1]} : vector<2x128xf32> to vector<2x32xf32>
    %263 = arith.mulf %262, %230 : vector<2x32xf32>
    %264 = vector.extract_strided_slice %260 {offsets = [0, 32], sizes = [2, 32], strides = [1, 1]} : vector<2x128xf32> to vector<2x32xf32>
    %265 = vector.extract_strided_slice %261 {offsets = [0, 64], sizes = [2, 32], strides = [1, 1]} : vector<2x128xf32> to vector<2x32xf32>
    %266 = arith.mulf %264, %265 : vector<2x32xf32>
    %267 = arith.addf %263, %266 : vector<2x32xf32>
    %268 = vector.extract_strided_slice %260 {offsets = [0, 96], sizes = [2, 32], strides = [1, 1]} : vector<2x128xf32> to vector<2x32xf32>
    %269 = math.tanh %267 : vector<2x32xf32>
    %270 = arith.mulf %268, %269 : vector<2x32xf32>
    %271 = vector.extract_strided_slice %10 {offsets = [14, 0], sizes = [2, 128], strides = [1, 1]} : vector<16x128xf32> to vector<2x128xf32>
    %cst_39 = arith.constant dense<0.000000e+00> : vector<2x128xf32>
    %272 = tpu.matmul %251, %1, %cst_39 {dimension_numbers = #tpu.dot_dimension_numbers<[1], [0], [0], [1], [0, 0, 1, 1], [], []>} : vector<2x32xf32>, vector<32x128xf32>, vector<2x128xf32> -> vector<2x128xf32>
    %273 = arith.addf %271, %272 : vector<2x128xf32>
    %274 = arith.negf %273 : vector<2x128xf32>
    %275 = math.exp %274 : vector<2x128xf32>
    %cst_40 = arith.constant 1.000000e+00 : f32
    %276 = vector.broadcast %cst_40 : f32 to vector<2x128xf32>
    %277 = arith.addf %276, %275 : vector<2x128xf32>
    %278 = arith.divf %276, %277 : vector<2x128xf32>
    %279 = math.tanh %273 : vector<2x128xf32>
    %280 = vector.extract_strided_slice %278 {offsets = [0, 0], sizes = [2, 32], strides = [1, 1]} : vector<2x128xf32> to vector<2x32xf32>
    %281 = arith.mulf %280, %248 : vector<2x32xf32>
    %282 = vector.extract_strided_slice %278 {offsets = [0, 32], sizes = [2, 32], strides = [1, 1]} : vector<2x128xf32> to vector<2x32xf32>
    %283 = vector.extract_strided_slice %279 {offsets = [0, 64], sizes = [2, 32], strides = [1, 1]} : vector<2x128xf32> to vector<2x32xf32>
    %284 = arith.mulf %282, %283 : vector<2x32xf32>
    %285 = arith.addf %281, %284 : vector<2x32xf32>
    %286 = vector.extract_strided_slice %278 {offsets = [0, 96], sizes = [2, 32], strides = [1, 1]} : vector<2x128xf32> to vector<2x32xf32>
    %287 = math.tanh %285 : vector<2x32xf32>
    %288 = arith.mulf %286, %287 : vector<2x32xf32>
    %289 = tpu.concatenate %288, %270 in 1 : vector<2x32xf32>, vector<2x32xf32> -> vector<2x64xf32>
    %cst_41 = arith.constant dense<0.000000e+00> : vector<2x128xf32>
    %290 = tpu.matmul %289, %2, %cst_41 {dimension_numbers = #tpu.dot_dimension_numbers<[1], [0], [0], [1], [0, 0, 1, 1], [], []>} : vector<2x64xf32>, vector<64x128xf32>, vector<2x128xf32> -> vector<2x128xf32>
    %291 = vector.broadcast %5 : vector<1x128xf32> to vector<2x128xf32>
    %292 = arith.addf %290, %291 : vector<2x128xf32>
    %293 = arith.negf %292 : vector<2x128xf32>
    %294 = math.exp %293 : vector<2x128xf32>
    %cst_42 = arith.constant 1.000000e+00 : f32
    %295 = vector.broadcast %cst_42 : f32 to vector<2x128xf32>
    %296 = arith.addf %295, %294 : vector<2x128xf32>
    %297 = arith.divf %295, %296 : vector<2x128xf32>
    %298 = math.tanh %292 : vector<2x128xf32>
    %299 = vector.extract_strided_slice %297 {offsets = [0, 0], sizes = [2, 32], strides = [1, 1]} : vector<2x128xf32> to vector<2x32xf32>
    %300 = arith.mulf %299, %267 : vector<2x32xf32>
    %301 = vector.extract_strided_slice %297 {offsets = [0, 32], sizes = [2, 32], strides = [1, 1]} : vector<2x128xf32> to vector<2x32xf32>
    %302 = vector.extract_strided_slice %298 {offsets = [0, 64], sizes = [2, 32], strides = [1, 1]} : vector<2x128xf32> to vector<2x32xf32>
    %303 = arith.mulf %301, %302 : vector<2x32xf32>
    %304 = arith.addf %300, %303 : vector<2x32xf32>
    %305 = vector.extract_strided_slice %297 {offsets = [0, 96], sizes = [2, 32], strides = [1, 1]} : vector<2x128xf32> to vector<2x32xf32>
    %306 = math.tanh %304 : vector<2x32xf32>
    %307 = arith.mulf %305, %306 : vector<2x32xf32>
    %cst_43 = arith.constant dense<0.000000e+00> : vector<2x128xf32>
    %308 = tpu.matmul %307, %3, %cst_43 {dimension_numbers = #tpu.dot_dimension_numbers<[1], [0], [0], [1], [0, 0, 1, 1], [], []>} : vector<2x32xf32>, vector<32x128xf32>, vector<2x128xf32> -> vector<2x128xf32>
    %309 = vector.broadcast %6 : vector<1x128xf32> to vector<2x128xf32>
    %310 = arith.addf %308, %309 : vector<2x128xf32>
    %c0_44 = arith.constant 0 : index
    %c0_45 = arith.constant 0 : index
    %311 = vector.load %arg3[%c0_44, %c0_45] : memref<2x128xf32, #tpu.memory_space<vmem>>, vector<2x128xf32>
    tpu.vector_store %arg3[%c0_44, %c0_45], %310 {strides = array<i32>} : memref<2x128xf32, #tpu.memory_space<vmem>>, vector<2x128xf32>,
    return
  }
}

</mosaic_0001>

<bundles_post_ra>
// kernel: tpu_custom_call.1
= control target key start
LH: loop header
LB: loop body
LE: loop exit
PB: predicated region body
PF: predicated region fallthrough
CT: control target
= control target key end

     0   :  { %8 = vsyncpa [#allocation3], 0  ;;  %s3055_s0 = inlined_call_operand.vmem [shape: f32[16,8], index: 0, kind: input, shape index: {}]   ;;  %s3056_s1 = inlined_call_operand.hbm [shape: f32[136,128], index: 1, kind: input, shape index: {}]   ;;  %s3057_s2 = inlined_call_operand.vmem [shape: f32[3,128], index: 2, kind: input, shape index: {}]   ;;  %s3058_s3 = inlined_call_operand.hbm [shape: f32[2,128], index: 3, kind: output, shape index: {}]  }
   0x1   :  { %9 = vsyncpa [#allocation4], 0  ;;  %s2674_s12 = smov [#allocation2]   ;;  %s2626_s16 = scalar_lea.hbm %s3056_s1, 2176 }
   0x2   :  { %s17_s13 = sshll.u32 %s2674_s12, 4  ;;  %p2627_p0 = scmp.ne.s32.totalorder %s3056_s1, %s2626_s16  ;;  %s18_s13 = int_to_ptr.vmem [resolvable:$true] %s17_s13 }
   0x3   :  { %p2630_p1 = scmp.lt.u32.totalorder %s2626_s16, %s3056_s1 }
   0x5   :  { %p2632_p2 = pnand %p2630_p1, %p2627_p0 }
   0x7   :  { %2635 = shalt.err (!%p2632_p2)
}
   0x8   :  { %s2636_s21 = scalar_lea.vmem %s18_s13, 2176  ;;  %p2641_p4 = scmp.lt.s32.totalorder %s18_s13, %s18_s13 }
   0x9   :  { %p2637_p3 = scmp.ne.s32.totalorder %s18_s13, %s2636_s21  ;;  %p2642_p5 = scmp.lt.s32.totalorder %s2636_s21, %s2636_s21 }
   0xb   :  { %p2643_p6 = por %p2642_p5, %p2641_p4 }
   0xd   :  { %p2644_p7 = pnand %p2643_p6, %p2637_p3 }
   0xf   :  { %2647 = shalt.err (!%p2644_p7)
}
  0x10   :  { %s2675_s22 = smov 128   ;;  %s2676_s23 = smov 8  }
  0x11   :  { %23 = dma.hbm_to_vmem [thread:$0]  %s3056_s1, 2176, %s18_s13, [#allocation3], %s2675_s22, %s2675_s22, %s2676_s23  }
  0x12   :  { %2670 = dma.done.wait [#allocation3], 2176  }
  0x13   :  { %2671 = vsyncadd [#allocation3], 4294965120  ;;  %v2677_v0 = vmov 0.0|0.0   ;;  %vm2678_vm0 = vmmov 0   ;;  %v2679_v1 = vmov 0.0   ;;  %vm55_vm1 = vcmask 64512  }
  0x14   :  { %2338 = vmatprep.subr.bf16.mxu1 %v2677_v0  ;;  %2095 = vmatprep.mubr.msk.f32.mxu1 %vm2678_vm0, %v2679_v1  ;;  %v30_v2 = vld [vmem:[#allocation2 + $0x8] sm:$0xff]  ;;  %v31_v3 = vld [vmem:[#allocation2 + $0x10] sm:$0xff]  ;;  %v29_v4 = vld [vmem:[#allocation2] sm:$0xff]  ;;  %s2680_s30 = smov 96   ;;  %s2681_s4 = smov 32   ;;  %vm137_vm2 = vcmask 261120  }
  0x15   :  { %v2719_v5 = vpack.c.bf16 %v31_v3, %v30_v2  ;;  %2082 = vmatprep.subr.mxu0 %v29_v4  ;;  %v49_v6 = vld [vmem:[%s3055_s0] sm:$0xff]  ;;  %v50_v7 = vld [vmem:[%s3055_s0 + $0x8] sm:$0xff]  ;;  %v33_v9 = vld [vmem:[#allocation2 + $0x20] sm:$0xff]  ;;  %vm245_vm3 = vcmask 523264   ;;  %s2682_s7 = smov 64   ;;  %s2683_s10 = smov [#allocation5]  }
  0x16   :  { %v32_v8 = vld [vmem:[#allocation2 + $0x18] sm:$0xff]  ;;  %2083 = vmatpush3.msra.mxu0 %v29_v4  ;;  %2084 = vmatprep.mubr.msk.f32.mxu0 %vm55_vm1, %v49_v6  ;;  %v1925_v11 = vld [vmem:[%s3057_s2] ss:$0 sm:$0xff]  ;;  %v34_v29 = vld [vmem:[#allocation2 + $0x28] sm:$0xff]  ;;  %s1916_s11 = sshll.u32 %s2683_s10, 4  ;;  %s1917_s11 = int_to_ptr.vmem [resolvable:$true] %s1916_s11 }
  0x17   :  { %2340 = vmatpush3.bf16.msra.mxu1 %v2719_v5  ;;  %2085 = vmatmul.mubr.msk.f32.vlgmr.msra.gmra.mrb[0].mxu0 %vm55_vm1, %v50_v7  ;;  %v2728_v10 = vpack.c.bf16 %v33_v9, %v32_v8  ;;  %v35_v30 = vld [vmem:[#allocation2 + $0x30] sm:$0xff]  ;;  %v36_v31 = vld [vmem:[#allocation2 + $0x38] sm:$0xff]  ;;  %v37_v33 = vld [vmem:[#allocation2 + $0x40] sm:$0xff]  ;;  %s2648_s12 = scalar_lea.vmem %s1917_s11, 32  ;;  %p2653_p9 = scmp.lt.s32.totalorder %s1917_s11, %s1917_s11 }
  0x18   :  { %2341 = vmatprep.subr.bf16.mxu1 %v2677_v0  ;;  %2344 = vmatprep.subr.bf16.mxu0 %v2677_v0  ;;  %v2756_v32 = vpack.c.bf16 %v35_v30, %v34_v29  ;;  %v2759_v34 = vpack.c.bf16 %v37_v33, %v36_v31  ;;  %v38_v35 = vld [vmem:[#allocation2 + $0x48] sm:$0xff]  ;;  %v39_v36 = vld [vmem:[#allocation2 + $0x50] sm:$0xff]  ;;  %v40_v38 = vld [vmem:[#allocation2 + $0x58] sm:$0xff]  ;;  %p2649_p8 = scmp.ne.s32.totalorder %s1917_s11, %s2648_s12  ;;  %p2654_p10 = scmp.lt.s32.totalorder %s2648_s12, %s2648_s12 }
  0x19   :  { %2114 = vmatprep.mubr.msk.f32.mxu0 %vm2678_vm0, %v2679_v1  ;;  %v2763_v37 = vpack.c.bf16 %v39_v36, %v38_v35  ;;  %v41_v39 = vld [vmem:[#allocation2 + $0x60] sm:$0xff]  ;;  %v2796_v46 = vld [vmem:[%s3057_s2 + $0x1] ss:$0 sm:$0xff] }
  0x1a   :  { %2346 = vmatpush3.bf16.msra.mxu0 %v2756_v32  ;;  %v2768_v41 = vpack.c.bf16 %v41_v39, %v40_v38  ;;  %p2655_p11 = por %p2654_p10, %p2653_p9 }
  0x1b   :  { %2343 = vmatpush3.bf16.msra.mxu1 %v2728_v10  ;;  %2347 = vmatprep.subr.bf16.mxu0 %v2677_v0 }
  0x1c   :  { %2356 = vmatprep.subr.bf16.mxu1 %v2677_v0  ;;  %p2656_p12 = pnand %p2655_p11, %p2649_p8 }
  0x1e   :  { %2096 = vmatmul.mubr.f32.vlgmr.msra.gmra.mrb[0].mxu1 %v2679_v1  ;;  %2349 = vmatpush3.bf16.msra.mxu0 %v2759_v34 }
  0x1f   :  { %2358 = vmatpush3.bf16.msra.mxu1 %v2719_v5  ;;  %2125 = vmatprep.mubr.msk.f32.mxu1 %vm2678_vm0, %v2679_v1 }
  0x20   :  { %2359 = vmatprep.subr.bf16.mxu1 %v2677_v0  ;;  %2350 = vmatprep.subr.bf16.mxu0 %v2677_v0 }
  0x22   :  { %2352 = vmatpush3.bf16.msra.mxu0 %v2763_v37 }
  0x23   :  { %2361 = vmatpush3.bf16.msra.mxu1 %v2728_v10  ;;  %2353 = vmatprep.subr.bf16.mxu0 %v2677_v0 }
  0x24   :  { %2362 = vmatprep.subr.bf16.mxu1 %v2677_v0 }
  0x26   :  { %2355 = vmatpush3.bf16.msra.mxu0 %v2768_v41 }
  0x27   :  { %2374 = vmatprep.subr.bf16.mxu0 %v2677_v0 }
  0xea   :  { %v2086_v12 = vpop.f32.mrb[0].mxu0 }
  0xeb   :  { %v2746_v13 = vadd.f32 %v2086_v12, %v1925_v11  ;;  %v128_v14 = vpop.f32.mrb[1].mxu0 }
  0xec   :  { %v2748_v15 = vadd.f32 %v1925_v11, %v128_v14 }
  0xf1   :  { %v207_v16 = vpop.f32.mrb[0].mxu1 }
  0xf2   :  { %v211_v17 = vadd.f32 %v207_v16, %v2748_v15  ;;  %v2097_v18 = vpop.f32.mrb[1].mxu1 }
  0xf4   :  { %2498 = vtanh.f32 %v211_v17  ;;  %v1928_v20 = vmul.f32 -1.442695, %v211_v17 }
  0xf6   :  { %2500 = vpow2.f32 %v1928_v20 }
  0xfe   :  { %v2499_v19 = vpop.eup %2498 }
  0xff   :  { %221 = vrot.lane.b32.xlu0 %v2499_v19, %s2680_s30 }
 0x100   :  { %v2501_v21 = vpop.eup %2500 }
 0x101   :  { %v215_v22 = vadd.f32 1.0, %v2501_v21 }
 0x103   :  { %2502 = vrcp.f32 %v215_v22 }
 0x10d   :  { %v2503_v23 = vpop.eup %2502 }
 0x10e   :  { %v219_v26 = vmul.f32 0.0, %v2503_v23 }
 0x171   :  { %v222_v24 = vpop.permute.xlu0 %221 }
 0x172   :  { %v224_v25 = vmul.f32 %v2503_v23, %v222_v24 }
 0x174   :  { %226 = vrot.lane.b32.xlu0 %v224_v25, %s2680_s30 }
 0x1e6   :  { %v227_v27 = vpop.permute.xlu0 %226 }
 0x1e7   :  { %v2753_v28 = vadd.f32 %v227_v27, %v219_v26 }
 0x1e9   :  { %2504 = vtanh.f32 %v2753_v28  ;;  %v427_v7 = vrot.slane %v2753_v28, 6 }
 0x1f3   :  { %v2505_v40 = vpop.eup %2504 }
 0x1f4   :  { %232 = vrot.lane.b32.xlu1 %v2505_v40, %s2680_s30 }
 0x266   :  { %v233_v42 = vpop.permute.xlu1 %232 }
 0x267   :  { %v235_v43 = vmul.f32 %v2503_v23, %v233_v42 }
 0x269   :  { %237 = vrot.lane.b32.xlu1 %v235_v43, %s2681_s4 }
 0x2db   :  { %v238_v44 = vpop.permute.xlu1 %237 }
 0x2dc   :  { %v240_v45 = vsel %vm137_vm2, %v238_v44, 0.0  ;;  %2126 = vmatmul.mubr.msk.f32.vlgmr.msra.gmra.mrb[2].mxu1 %vm137_vm2, %v238_v44 }
 0x2dd   :  { %2115 = vmatmul.mubr.msk.f32.vlgmr.msra.gmra.mrb[2].mxu0 %vm245_vm3, %v240_v45  ;;  %2364 = vmatpush3.bf16.msra.mxu1 %v2756_v32 }
 0x2de   :  { %2365 = vmatprep.subr.bf16.mxu1 %v2677_v0  ;;  %2376 = vmatpush3.bf16.msra.mxu0 %v2719_v5 }
 0x2df   :  { %2377 = vmatprep.subr.bf16.mxu0 %v2677_v0  ;;  %2144 = vmatprep.mubr.msk.f32.mxu1 %vm2678_vm0, %v2679_v1 }
 0x2e0   :  { %2155 = vmatprep.mubr.msk.f32.mxu0 %vm2678_vm0, %v2679_v1 }
 0x2e1   :  { %2367 = vmatpush3.bf16.msra.mxu1 %v2759_v34 }
 0x2e2   :  { %2368 = vmatprep.subr.bf16.mxu1 %v2677_v0  ;;  %2379 = vmatpush3.bf16.msra.mxu0 %v2728_v10 }
 0x2e3   :  { %2380 = vmatprep.subr.bf16.mxu0 %v2677_v0 }
 0x2e5   :  { %2370 = vmatpush3.bf16.msra.mxu1 %v2763_v37 }
 0x2e6   :  { %2371 = vmatprep.subr.bf16.mxu1 %v2677_v0 }
 0x2e9   :  { %2373 = vmatpush3.bf16.msra.mxu1 %v2768_v41 }
 0x2ea   :  { %2392 = vmatprep.subr.bf16.mxu1 %v2677_v0 }
 0x3af   :  { %v411_v47 = vpop.f32.mrb[2].mxu1 }
 0x3b0   :  { %v416_v48 = vrot.slane %v411_v47, 6  ;;  %v315_v49 = vpop.f32.mrb[2].mxu0  ;;  %v2127_v50 = vpop.f32.mrb[3].mxu1 }
 0x3b1   :  { %v316_v51 = vadd.f32 %v2796_v46, %v315_v49  ;;  %v2116_v52 = vpop.f32.mrb[3].mxu0 }
 0x3b2   :  { %v418_v53 = vadd.f32 %v416_v48, %v2748_v15 }
 0x3b3   :  { %2506 = vtanh.f32 %v316_v51  ;;  %v1931_v56 = vmul.f32 -1.442695, %v316_v51 }
 0x3b4   :  { %2508 = vtanh.f32 %v418_v53  ;;  %v1933_v57 = vmul.f32 -1.442695, %v418_v53 }
 0x3b5   :  { %2510 = vpow2.f32 %v1931_v56 }
 0x3b6   :  { %2512 = vpow2.f32 %v1933_v57 }
 0x3bd   :  { %v2507_v54 = vpop.eup %2506 }
 0x3be   :  { %v2509_v55 = vpop.eup %2508  ;;  %328 = vrot.lane.b32.xlu0 %v2507_v54, %s2680_s30 }
 0x3bf   :  { %431 = vrot.lane.b32.xlu1 %v2509_v55, %s2680_s30  ;;  %v2511_v58 = vpop.eup %2510 }
 0x3c0   :  { %v2513_v59 = vpop.eup %2512  ;;  %v322_v60 = vadd.f32 1.0, %v2511_v58 }
 0x3c1   :  { %v422_v61 = vadd.f32 1.0, %v2513_v59 }
 0x3c2   :  { %2514 = vrcp.f32 %v322_v60 }
 0x3c3   :  { %2516 = vrcp.f32 %v422_v61 }
 0x3cc   :  { %v2515_v62 = vpop.eup %2514 }
 0x3cd   :  { %v2517_v2 = vpop.eup %2516  ;;  %v326_v8 = vmul.f32 0.0, %v2515_v62 }
 0x3ce   :  { %v429_v11 = vmul.f32 %v2517_v2, %v427_v7 }
 0x430   :  { %v329_v63 = vpop.permute.xlu0 %328 }
 0x431   :  { %v331_v3 = vmul.f32 %v2515_v62, %v329_v63  ;;  %v432_v4 = vpop.permute.xlu1 %431 }
 0x432   :  { %v434_v6 = vmul.f32 %v2517_v2, %v432_v4 }
 0x433   :  { %333 = vrot.lane.b32.xlu0 %v331_v3, %s2680_s30 }
 0x434   :  { %436 = vrot.lane.b32.xlu1 %v434_v6, %s2680_s30 }
 0x4a5   :  { %v334_v9 = vpop.permute.xlu0 %333 }
 0x4a6   :  { %v2805_v12 = vadd.f32 %v334_v9, %v326_v8  ;;  %v437_v14 = vpop.permute.xlu1 %436 }
 0x4a7   :  { %v2807_v16 = vadd.f32 %v437_v14, %v429_v11 }
 0x4a8   :  { %2518 = vtanh.f32 %v2805_v12 }
 0x4a9   :  { %2520 = vtanh.f32 %v2807_v16  ;;  %v641_v57 = vrot.slane %v2807_v16, 6 }
 0x4b2   :  { %v2519_v17 = vpop.eup %2518 }
 0x4b3   :  { %v2521_v18 = vpop.eup %2520  ;;  %339 = vrot.lane.b32.xlu0 %v2519_v17, %s2680_s30 }
 0x4b4   :  { %442 = vrot.lane.b32.xlu1 %v2521_v18, %s2680_s30 }
 0x525   :  { %v340_v19 = vpop.permute.xlu0 %339 }
 0x526   :  { %v342_v20 = vmul.f32 %v2515_v62, %v340_v19  ;;  %v443_v21 = vpop.permute.xlu1 %442 }
 0x527   :  { %v445_v22 = vmul.f32 %v2517_v2, %v443_v21 }
 0x528   :  { %v451_v23 = vrot.slane %v342_v20, 6 }
 0x529   :  { %447 = vrot.lane.b32.xlu0 %v445_v22, %s2681_s4  ;;  %v554_v24 = vrot.slane %v445_v22, 2 }
 0x52a   :  { %452 = vrot.lane.b32.xlu1 %v451_v23, %s2682_s7 }
 0x52d   :  { %555 = vrot.lane.b32.xlu0 %v554_v24, %s2681_s4 }
 0x59b   :  { %v448_v25 = vpop.permute.xlu0 %447 }
 0x59c   :  { %v453_v26 = vpop.permute.xlu1 %452 }
 0x59d   :  { %v455_v27 = vsel %vm137_vm2, %v448_v25, %v453_v26 }
 0x59e   :  { %v457_v28 = vrot.slane %v455_v27, 2 }
 0x59f   :  { %v556_v29 = vpop.permute.xlu0 %555 }
 0x5a0   :  { %2145 = vmatmul.mubr.msk.f32.vlgmr.msra.gmra.mrb[4].mxu1 %vm245_vm3, %v457_v28  ;;  %2156 = vmatmul.mubr.msk.f32.vlgmr.msra.gmra.mrb[4].mxu0 %vm137_vm2, %v556_v29 }
 0x5a1   :  { %2382 = vmatpush3.bf16.msra.mxu0 %v2756_v32  ;;  %2394 = vmatpush3.bf16.msra.mxu1 %v2719_v5 }
 0x5a2   :  { %2383 = vmatprep.subr.bf16.mxu0 %v2677_v0  ;;  %2395 = vmatprep.subr.bf16.mxu1 %v2677_v0 }
 0x5a3   :  { %2174 = vmatprep.mubr.msk.f32.mxu0 %vm2678_vm0, %v2679_v1  ;;  %2185 = vmatprep.mubr.msk.f32.mxu1 %vm2678_vm0, %v2679_v1 }
 0x5a5   :  { %2385 = vmatpush3.bf16.msra.mxu0 %v2759_v34  ;;  %2397 = vmatpush3.bf16.msra.mxu1 %v2728_v10 }
 0x5a6   :  { %2386 = vmatprep.subr.bf16.mxu0 %v2677_v0  ;;  %2398 = vmatprep.subr.bf16.mxu1 %v2677_v0 }
 0x5a9   :  { %2388 = vmatpush3.bf16.msra.mxu0 %v2763_v37 }
 0x5aa   :  { %2389 = vmatprep.subr.bf16.mxu0 %v2677_v0 }
 0x5ad   :  { %2391 = vmatpush3.bf16.msra.mxu0 %v2768_v41 }
 0x5ae   :  { %2410 = vmatprep.subr.bf16.mxu0 %v2677_v0 }
 0x673   :  { %v526_v30 = vpop.f32.mrb[4].mxu1  ;;  %v625_v31 = vpop.f32.mrb[4].mxu0 }
 0x674   :  { %v527_v33 = vadd.f32 %v2796_v46, %v526_v30  ;;  %v630_v35 = vrot.slane %v625_v31, 4  ;;  %v2146_v36 = vpop.f32.mrb[5].mxu1  ;;  %v2157_v38 = vpop.f32.mrb[5].mxu0 }
 0x676   :  { %2522 = vtanh.f32 %v527_v33  ;;  %v632_v39 = vadd.f32 %v630_v35, %v2748_v15  ;;  %v1935_v43 = vmul.f32 -1.442695, %v527_v33 }
 0x678   :  { %2524 = vtanh.f32 %v632_v39  ;;  %v1937_v44 = vmul.f32 -1.442695, %v632_v39 }
 0x679   :  { %2526 = vpow2.f32 %v1935_v43 }
 0x67a   :  { %2528 = vpow2.f32 %v1937_v44 }
 0x680   :  { %v2523_v40 = vpop.eup %2522 }
 0x681   :  { %539 = vrot.lane.b32.xlu1 %v2523_v40, %s2680_s30 }
 0x682   :  { %v2525_v42 = vpop.eup %2524 }
 0x683   :  { %645 = vrot.lane.b32.xlu0 %v2525_v42, %s2680_s30  ;;  %v2527_v45 = vpop.eup %2526 }
 0x684   :  { %v2529_v47 = vpop.eup %2528  ;;  %v533_v48 = vadd.f32 1.0, %v2527_v45 }
 0x685   :  { %v636_v49 = vadd.f32 1.0, %v2529_v47 }
 0x686   :  { %2530 = vrcp.f32 %v533_v48 }
 0x687   :  { %2532 = vrcp.f32 %v636_v49 }
 0x690   :  { %v2531_v50 = vpop.eup %2530 }
 0x691   :  { %v2533_v53 = vpop.eup %2532  ;;  %v537_v56 = vmul.f32 %v2531_v50, %v2805_v12 }
 0x692   :  { %v643_v60 = vmul.f32 %v2533_v53, %v641_v57 }
 0x6f3   :  { %v540_v51 = vpop.permute.xlu1 %539 }
 0x6f4   :  { %v542_v52 = vmul.f32 %v2531_v50, %v540_v51 }
 0x6f5   :  { %v646_v54 = vpop.permute.xlu0 %645 }
 0x6f6   :  { %544 = vrot.lane.b32.xlu1 %v542_v52, %s2680_s30  ;;  %v648_v55 = vmul.f32 %v2533_v53, %v646_v54 }
 0x6f8   :  { %650 = vrot.lane.b32.xlu0 %v648_v55, %s2680_s30 }
 0x768   :  { %v545_v58 = vpop.permute.xlu1 %544 }
 0x769   :  { %v2843_v59 = vadd.f32 %v545_v58, %v537_v56 }
 0x76a   :  { %v651_v61 = vpop.permute.xlu0 %650 }
 0x76b   :  { %2534 = vtanh.f32 %v2843_v59  ;;  %v2846_v62 = vadd.f32 %v651_v61, %v643_v60 }
 0x76d   :  { %2536 = vtanh.f32 %v2846_v62  ;;  %v855_v43 = vrot.slane %v2846_v62, 6 }
 0x775   :  { %v2535_v63 = vpop.eup %2534 }
 0x776   :  { %550 = vrot.lane.b32.xlu1 %v2535_v63, %s2680_s30 }
 0x777   :  { %v2537_v2 = vpop.eup %2536 }
 0x778   :  { %656 = vrot.lane.b32.xlu0 %v2537_v2, %s2680_s30 }
 0x7e8   :  { %v551_v3 = vpop.permute.xlu1 %550 }
 0x7e9   :  { %v553_v4 = vmul.f32 %v2531_v50, %v551_v3 }
 0x7ea   :  { %v657_v7 = vpop.permute.xlu0 %656 }
 0x7eb   :  { %v665_v6 = vrot.slane %v553_v4, 4  ;;  %v659_v8 = vmul.f32 %v2533_v53, %v657_v7 }
 0x7ed   :  { %666 = vrot.lane.b32.xlu0 %v665_v6, %s2682_s7  ;;  %661 = vrot.lane.b32.xlu1 %v659_v8, %s2681_s4  ;;  %v768_v9 = vrot.slane %v659_v8, 4 }
 0x7f1   :  { %769 = vrot.lane.b32.xlu1 %v768_v9, %s2681_s4 }
 0x85f   :  { %v667_v11 = vpop.permute.xlu0 %666  ;;  %v662_v12 = vpop.permute.xlu1 %661 }
 0x860   :  { %v669_v14 = vsel %vm137_vm2, %v662_v12, %v667_v11 }
 0x861   :  { %v671_v16 = vrot.slane %v669_v14, 4 }
 0x863   :  { %v770_v17 = vpop.permute.xlu1 %769  ;;  %2175 = vmatmul.mubr.msk.f32.vlgmr.msra.gmra.mrb[6].mxu0 %vm245_vm3, %v671_v16 }
 0x864   :  { %2186 = vmatmul.mubr.msk.f32.vlgmr.msra.gmra.mrb[6].mxu1 %vm137_vm2, %v770_v17  ;;  %2412 = vmatpush3.bf16.msra.mxu0 %v2719_v5 }
 0x865   :  { %2400 = vmatpush3.bf16.msra.mxu1 %v2756_v32  ;;  %2413 = vmatprep.subr.bf16.mxu0 %v2677_v0 }
 0x866   :  { %2401 = vmatprep.subr.bf16.mxu1 %v2677_v0  ;;  %2204 = vmatprep.mubr.msk.f32.mxu1 %vm2678_vm0, %v2679_v1 }
 0x867   :  { %2215 = vmatprep.mubr.msk.f32.mxu0 %vm2678_vm0, %v2679_v1 }
 0x868   :  { %2415 = vmatpush3.bf16.msra.mxu0 %v2728_v10 }
 0x869   :  { %2403 = vmatpush3.bf16.msra.mxu1 %v2759_v34  ;;  %2416 = vmatprep.subr.bf16.mxu0 %v2677_v0 }
 0x86a   :  { %2404 = vmatprep.subr.bf16.mxu1 %v2677_v0 }
 0x86d   :  { %2406 = vmatpush3.bf16.msra.mxu1 %v2763_v37 }
 0x86e   :  { %2407 = vmatprep.subr.bf16.mxu1 %v2677_v0 }
 0x871   :  { %2409 = vmatpush3.bf16.msra.mxu1 %v2768_v41 }
 0x872   :  { %2428 = vmatprep.subr.bf16.mxu1 %v2677_v0 }
 0x936   :  { %v740_v18 = vpop.f32.mrb[6].mxu0 }
 0x937   :  { %v741_v19 = vadd.f32 %v2796_v46, %v740_v18  ;;  %v2176_v20 = vpop.f32.mrb[7].mxu0  ;;  %v839_v21 = vpop.f32.mrb[6].mxu1 }
 0x938   :  { %v844_v22 = vrot.slane %v839_v21, 2  ;;  %v2187_v23 = vpop.f32.mrb[7].mxu1 }
 0x939   :  { %2538 = vtanh.f32 %v741_v19  ;;  %v1939_v27 = vmul.f32 -1.442695, %v741_v19 }
 0x93a   :  { %v846_v24 = vadd.f32 %v844_v22, %v2748_v15 }
 0x93c   :  { %2540 = vtanh.f32 %v846_v24  ;;  %v1941_v28 = vmul.f32 -1.442695, %v846_v24 }
 0x93d   :  { %2542 = vpow2.f32 %v1939_v27 }
 0x93e   :  { %2544 = vpow2.f32 %v1941_v28 }
 0x943   :  { %v2539_v25 = vpop.eup %2538 }
 0x944   :  { %753 = vrot.lane.b32.xlu0 %v2539_v25, %s2680_s30 }
 0x946   :  { %v2541_v26 = vpop.eup %2540 }
 0x947   :  { %859 = vrot.lane.b32.xlu1 %v2541_v26, %s2680_s30  ;;  %v2543_v29 = vpop.eup %2542 }
 0x948   :  { %v2545_v30 = vpop.eup %2544  ;;  %v747_v31 = vadd.f32 1.0, %v2543_v29 }
 0x949   :  { %v850_v33 = vadd.f32 1.0, %v2545_v30 }
 0x94a   :  { %2546 = vrcp.f32 %v747_v31 }
 0x94b   :  { %2548 = vrcp.f32 %v850_v33 }
 0x954   :  { %v2547_v35 = vpop.eup %2546 }
 0x955   :  { %v2549_v38 = vpop.eup %2548  ;;  %v751_v42 = vmul.f32 %v2547_v35, %v2843_v59 }
 0x956   :  { %v857_v47 = vmul.f32 %v2549_v38, %v855_v43 }
 0x9b6   :  { %v754_v36 = vpop.permute.xlu0 %753 }
 0x9b7   :  { %v756_v15 = vmul.f32 %v2547_v35, %v754_v36 }
 0x9b9   :  { %v860_v39 = vpop.permute.xlu1 %859  ;;  %758 = vrot.lane.b32.xlu0 %v756_v15, %s2680_s30 }
 0x9ba   :  { %v862_v40 = vmul.f32 %v2549_v38, %v860_v39 }
 0x9bc   :  { %864 = vrot.lane.b32.xlu1 %v862_v40, %s2680_s30 }
 0xa2b   :  { %v759_v44 = vpop.permute.xlu0 %758 }
 0xa2c   :  { %v2881_v45 = vadd.f32 %v759_v44, %v751_v42 }
 0xa2e   :  { %2550 = vtanh.f32 %v2881_v45  ;;  %v865_v48 = vpop.permute.xlu1 %864 }
 0xa2f   :  { %v2884_v49 = vadd.f32 %v865_v48, %v857_v47 }
 0xa31   :  { %2552 = vtanh.f32 %v2884_v49  ;;  %v1066_v25 = vrot.slane %v2884_v49, 6 }
 0xa38   :  { %v2551_v50 = vpop.eup %2550 }
 0xa39   :  { %764 = vrot.lane.b32.xlu0 %v2551_v50, %s2680_s30 }
 0xa3b   :  { %v2553_v51 = vpop.eup %2552 }
 0xa3c   :  { %870 = vrot.lane.b32.xlu1 %v2553_v51, %s2680_s30 }
 0xaab   :  { %v765_v52 = vpop.permute.xlu0 %764 }
 0xaac   :  { %v767_v53 = vmul.f32 %v2547_v35, %v765_v52 }
 0xaae   :  { %v879_v54 = vrot.slane %v767_v53, 2  ;;  %v871_v55 = vpop.permute.xlu1 %870 }
 0xaaf   :  { %v873_v56 = vmul.f32 %v2549_v38, %v871_v55 }
 0xab0   :  { %880 = vrot.lane.b32.xlu1 %v879_v54, %s2682_s7 }
 0xab1   :  { %875 = vrot.lane.b32.xlu0 %v873_v56, %s2681_s4  ;;  %v982_v57 = vrot.slane %v873_v56, 6 }
 0xab5   :  { %983 = vrot.lane.b32.xlu0 %v982_v57, %s2681_s4 }
 0xb22   :  { %v881_v58 = vpop.permute.xlu1 %880 }
 0xb23   :  { %v876_v59 = vpop.permute.xlu0 %875 }
 0xb24   :  { %v883_v60 = vsel %vm137_vm2, %v876_v59, %v881_v58 }
 0xb25   :  { %v885_v61 = vrot.slane %v883_v60, 6 }
 0xb27   :  { %2205 = vmatmul.mubr.msk.f32.vlgmr.msra.gmra.mrb[8].mxu1 %vm245_vm3, %v885_v61  ;;  %v984_v62 = vpop.permute.xlu0 %983 }
 0xb28   :  { %2216 = vmatmul.mubr.msk.f32.vlgmr.msra.gmra.mrb[8].mxu0 %vm137_vm2, %v984_v62  ;;  %2430 = vmatpush3.bf16.msra.mxu1 %v2719_v5 }
 0xb29   :  { %2418 = vmatpush3.bf16.msra.mxu0 %v2756_v32  ;;  %2431 = vmatprep.subr.bf16.mxu1 %v2677_v0 }
 0xb2a   :  { %2419 = vmatprep.subr.bf16.mxu0 %v2677_v0  ;;  %2245 = vmatprep.mubr.msk.f32.mxu1 %vm2678_vm0, %v2679_v1 }
 0xb2b   :  { %2234 = vmatprep.mubr.msk.f32.mxu0 %vm2678_vm0, %v2679_v1 }
 0xb2c   :  { %2433 = vmatpush3.bf16.msra.mxu1 %v2728_v10 }
 0xb2d   :  { %2421 = vmatpush3.bf16.msra.mxu0 %v2759_v34  ;;  %2434 = vmatprep.subr.bf16.mxu1 %v2677_v0 }
 0xb2e   :  { %2422 = vmatprep.subr.bf16.mxu0 %v2677_v0 }
 0xb31   :  { %2424 = vmatpush3.bf16.msra.mxu0 %v2763_v37 }
 0xb32   :  { %2425 = vmatprep.subr.bf16.mxu0 %v2677_v0 }
 0xb35   :  { %2427 = vmatpush3.bf16.msra.mxu0 %v2768_v41 }
 0xb36   :  { %2446 = vmatprep.subr.bf16.mxu0 %v2677_v0 }
 0xbfa   :  { %v954_v63 = vpop.f32.mrb[8].mxu1 }
 0xbfb   :  { %v955_v2 = vadd.f32 %v2796_v46, %v954_v63  ;;  %v2206_v3 = vpop.f32.mrb[9].mxu1  ;;  %v1053_v4 = vpop.f32.mrb[8].mxu0 }
 0xbfc   :  { %v1057_v6 = vadd.f32 %v1053_v4, %v2746_v13  ;;  %v2217_v7 = vpop.f32.mrb[9].mxu0 }
 0xbfd   :  { %2554 = vtanh.f32 %v955_v2  ;;  %v1943_v11 = vmul.f32 -1.442695, %v955_v2 }
 0xbfe   :  { %2556 = vtanh.f32 %v1057_v6  ;;  %v1945_v12 = vmul.f32 -1.442695, %v1057_v6 }
 0xbff   :  { %2558 = vpow2.f32 %v1943_v11 }
 0xc00   :  { %2560 = vpow2.f32 %v1945_v12 }
 0xc07   :  { %v2555_v8 = vpop.eup %2554 }
 0xc08   :  { %v2557_v9 = vpop.eup %2556  ;;  %967 = vrot.lane.b32.xlu1 %v2555_v8, %s2680_s30 }
 0xc09   :  { %1070 = vrot.lane.b32.xlu0 %v2557_v9, %s2680_s30  ;;  %v2559_v14 = vpop.eup %2558 }
 0xc0a   :  { %v2561_v16 = vpop.eup %2560  ;;  %v961_v17 = vadd.f32 1.0, %v2559_v14 }
 0xc0b   :  { %v1061_v18 = vadd.f32 1.0, %v2561_v16 }
 0xc0c   :  { %2562 = vrcp.f32 %v961_v17 }
 0xc0d   :  { %2564 = vrcp.f32 %v1061_v18 }
 0xc16   :  { %v2563_v19 = vpop.eup %2562 }
 0xc17   :  { %v2565_v21 = vpop.eup %2564  ;;  %v965_v26 = vmul.f32 %v2563_v19, %v2881_v45 }
 0xc18   :  { %v1068_v28 = vmul.f32 %v2565_v21, %v1066_v25 }
 0xc7a   :  { %v968_v20 = vpop.permute.xlu1 %967 }
 0xc7b   :  { %v970_v22 = vmul.f32 %v2563_v19, %v968_v20  ;;  %v1071_v23 = vpop.permute.xlu0 %1070 }
 0xc7c   :  { %v1073_v24 = vmul.f32 %v2565_v21, %v1071_v23 }
 0xc7d   :  { %972 = vrot.lane.b32.xlu1 %v970_v22, %s2680_s30 }
 0xc7e   :  { %1075 = vrot.lane.b32.xlu0 %v1073_v24, %s2680_s30 }
 0xcef   :  { %v973_v27 = vpop.permute.xlu1 %972 }
 0xcf0   :  { %v2919_v29 = vadd.f32 %v973_v27, %v965_v26  ;;  %v1076_v30 = vpop.permute.xlu0 %1075 }
 0xcf1   :  { %v2921_v31 = vadd.f32 %v1076_v30, %v1068_v28 }
 0xcf2   :  { %2566 = vtanh.f32 %v2919_v29 }
 0xcf3   :  { %2568 = vtanh.f32 %v2921_v31  ;;  %v1275_v4 = vrot.slane %v2921_v31, 6 }
 0xcfc   :  { %v2567_v33 = vpop.eup %2566 }
 0xcfd   :  { %v2569_v35 = vpop.eup %2568  ;;  %978 = vrot.lane.b32.xlu1 %v2567_v33, %s2680_s30 }
 0xcfe   :  { %1081 = vrot.lane.b32.xlu0 %v2569_v35, %s2680_s30 }
 0xd6f   :  { %v979_v36 = vpop.permute.xlu1 %978 }
 0xd70   :  { %v981_v15 = vmul.f32 %v2563_v19, %v979_v36  ;;  %v1082_v38 = vpop.permute.xlu0 %1081 }
 0xd71   :  { %v1084_v39 = vmul.f32 %v2565_v21, %v1082_v38 }
 0xd72   :  { %1090 = vrot.lane.b32.xlu0 %v981_v15, %s2682_s7 }
 0xd73   :  { %1086 = vrot.lane.b32.xlu1 %v1084_v39, %s2681_s4 }
 0xde4   :  { %v1091_v40 = vpop.permute.xlu0 %1090 }
 0xde5   :  { %v1087_v42 = vpop.permute.xlu1 %1086 }
 0xde6   :  { %v1093_v43 = vsel %vm137_vm2, %v1087_v42, %v1091_v40  ;;  %2246 = vmatmul.mubr.msk.f32.vlgmr.msra.gmra.mrb[10].mxu1 %vm137_vm2, %v1087_v42 }
 0xde7   :  { %2235 = vmatmul.mubr.msk.f32.vlgmr.msra.gmra.mrb[10].mxu0 %vm245_vm3, %v1093_v43  ;;  %2436 = vmatpush3.bf16.msra.mxu1 %v2756_v32 }
 0xde8   :  { %2437 = vmatprep.subr.bf16.mxu1 %v2677_v0  ;;  %2448 = vmatpush3.bf16.msra.mxu0 %v2719_v5 }
 0xde9   :  { %2449 = vmatprep.subr.bf16.mxu0 %v2677_v0  ;;  %2264 = vmatprep.mubr.msk.f32.mxu1 %vm2678_vm0, %v2679_v1 }
 0xdea   :  { %2275 = vmatprep.mubr.msk.f32.mxu0 %vm2678_vm0, %v2679_v1 }
 0xdeb   :  { %2439 = vmatpush3.bf16.msra.mxu1 %v2759_v34 }
 0xdec   :  { %2440 = vmatprep.subr.bf16.mxu1 %v2677_v0  ;;  %2451 = vmatpush3.bf16.msra.mxu0 %v2728_v10 }
 0xded   :  { %2452 = vmatprep.subr.bf16.mxu0 %v2677_v0 }
 0xdef   :  { %2442 = vmatpush3.bf16.msra.mxu1 %v2763_v37 }
 0xdf0   :  { %2443 = vmatprep.subr.bf16.mxu1 %v2677_v0 }
 0xdf3   :  { %2445 = vmatpush3.bf16.msra.mxu1 %v2768_v41 }
 0xdf4   :  { %2464 = vmatprep.subr.bf16.mxu1 %v2677_v0 }
 0xeb9   :  { %v1259_v44 = vpop.f32.mrb[10].mxu1 }
 0xeba   :  { %v1264_v45 = vrot.slane %v1259_v44, 6  ;;  %v1163_v47 = vpop.f32.mrb[10].mxu0  ;;  %v2247_v48 = vpop.f32.mrb[11].mxu1 }
 0xebb   :  { %v1164_v49 = vadd.f32 %v2796_v46, %v1163_v47  ;;  %v2236_v50 = vpop.f32.mrb[11].mxu0 }
 0xebc   :  { %v1266_v51 = vadd.f32 %v1264_v45, %v2746_v13 }
 0xebd   :  { %2570 = vtanh.f32 %v1164_v49  ;;  %v1947_v54 = vmul.f32 -1.442695, %v1164_v49 }
 0xebe   :  { %2572 = vtanh.f32 %v1266_v51  ;;  %v1949_v55 = vmul.f32 -1.442695, %v1266_v51 }
 0xebf   :  { %2574 = vpow2.f32 %v1947_v54 }
 0xec0   :  { %2576 = vpow2.f32 %v1949_v55 }
 0xec7   :  { %v2571_v52 = vpop.eup %2570 }
 0xec8   :  { %v2573_v53 = vpop.eup %2572  ;;  %1176 = vrot.lane.b32.xlu1 %v2571_v52, %s2680_s30 }
 0xec9   :  { %1279 = vrot.lane.b32.xlu0 %v2573_v53, %s2680_s30  ;;  %v2575_v56 = vpop.eup %2574 }
 0xeca   :  { %v2577_v57 = vpop.eup %2576  ;;  %v1170_v58 = vadd.f32 1.0, %v2575_v56 }
 0xecb   :  { %v1270_v59 = vadd.f32 1.0, %v2577_v57 }
 0xecc   :  { %2578 = vrcp.f32 %v1170_v58 }
 0xecd   :  { %2580 = vrcp.f32 %v1270_v59 }
 0xed6   :  { %v2579_v60 = vpop.eup %2578 }
 0xed7   :  { %v2581_v62 = vpop.eup %2580  ;;  %v1174_v6 = vmul.f32 %v2579_v60, %v2919_v29 }
 0xed8   :  { %v1277_v8 = vmul.f32 %v2581_v62, %v1275_v4 }
 0xf3a   :  { %v1177_v61 = vpop.permute.xlu1 %1176 }
 0xf3b   :  { %v1179_v63 = vmul.f32 %v2579_v60, %v1177_v61  ;;  %v1280_v2 = vpop.permute.xlu0 %1279 }
 0xf3c   :  { %v1282_v3 = vmul.f32 %v2581_v62, %v1280_v2 }
 0xf3d   :  { %1181 = vrot.lane.b32.xlu1 %v1179_v63, %s2680_s30 }
 0xf3e   :  { %1284 = vrot.lane.b32.xlu0 %v1282_v3, %s2680_s30 }
 0xfaf   :  { %v1182_v7 = vpop.permute.xlu1 %1181 }
 0xfb0   :  { %v2956_v9 = vadd.f32 %v1182_v7, %v1174_v6  ;;  %v1285_v11 = vpop.permute.xlu0 %1284 }
 0xfb1   :  { %v2958_v12 = vadd.f32 %v1285_v11, %v1277_v8 }
 0xfb2   :  { %2582 = vtanh.f32 %v2956_v9 }
 0xfb3   :  { %2584 = vtanh.f32 %v2958_v12  ;;  %v1489_v52 = vrot.slane %v2958_v12, 6 }
 0xfbc   :  { %v2583_v14 = vpop.eup %2582 }
 0xfbd   :  { %v2585_v16 = vpop.eup %2584  ;;  %1187 = vrot.lane.b32.xlu1 %v2583_v14, %s2680_s30 }
 0xfbe   :  { %1290 = vrot.lane.b32.xlu0 %v2585_v16, %s2680_s30 }
0x102f   :  { %v1188_v17 = vpop.permute.xlu1 %1187 }
0x1030   :  { %v1190_v18 = vmul.f32 %v2579_v60, %v1188_v17  ;;  %v1291_v19 = vpop.permute.xlu0 %1290 }
0x1031   :  { %v1293_v20 = vmul.f32 %v2581_v62, %v1291_v19 }
0x1032   :  { %v1299_v21 = vrot.slane %v1190_v18, 6 }
0x1033   :  { %1295 = vrot.lane.b32.xlu1 %v1293_v20, %s2681_s4  ;;  %v1402_v22 = vrot.slane %v1293_v20, 2 }
0x1034   :  { %1300 = vrot.lane.b32.xlu0 %v1299_v21, %s2682_s7 }
0x1037   :  { %1403 = vrot.lane.b32.xlu1 %v1402_v22, %s2681_s4 }
0x10a5   :  { %v1296_v23 = vpop.permute.xlu1 %1295 }
0x10a6   :  { %v1301_v24 = vpop.permute.xlu0 %1300 }
0x10a7   :  { %v1303_v25 = vsel %vm137_vm2, %v1296_v23, %v1301_v24 }
0x10a8   :  { %v1305_v26 = vrot.slane %v1303_v25, 2 }
0x10a9   :  { %v1404_v27 = vpop.permute.xlu1 %1403 }
0x10aa   :  { %2265 = vmatmul.mubr.msk.f32.vlgmr.msra.gmra.mrb[12].mxu1 %vm245_vm3, %v1305_v26  ;;  %2276 = vmatmul.mubr.msk.f32.vlgmr.msra.gmra.mrb[12].mxu0 %vm137_vm2, %v1404_v27 }
0x10ab   :  { %2454 = vmatpush3.bf16.msra.mxu0 %v2756_v32  ;;  %2466 = vmatpush3.bf16.msra.mxu1 %v2719_v5 }
0x10ac   :  { %2455 = vmatprep.subr.bf16.mxu0 %v2677_v0  ;;  %2467 = vmatprep.subr.bf16.mxu1 %v2677_v0 }
0x10ad   :  { %2294 = vmatprep.mubr.msk.f32.mxu0 %vm2678_vm0, %v2679_v1  ;;  %2305 = vmatprep.mubr.msk.f32.mxu1 %vm2678_vm0, %v2679_v1 }
0x10af   :  { %2457 = vmatpush3.bf16.msra.mxu0 %v2759_v34  ;;  %2469 = vmatpush3.bf16.msra.mxu1 %v2728_v10 }
0x10b0   :  { %2458 = vmatprep.subr.bf16.mxu0 %v2677_v0  ;;  %2470 = vmatprep.subr.bf16.mxu1 %v2677_v0 }
0x10b3   :  { %2460 = vmatpush3.bf16.msra.mxu0 %v2763_v37 }
0x10b4   :  { %2461 = vmatprep.subr.bf16.mxu0 %v2677_v0 }
0x10b7   :  { %2463 = vmatpush3.bf16.msra.mxu0 %v2768_v41 }
0x10b8   :  { %2482 = vmatprep.subr.bf16.mxu0 %v2677_v0 }
0x117d   :  { %v1374_v5 = vpop.f32.mrb[12].mxu1  ;;  %v1473_v28 = vpop.f32.mrb[12].mxu0 }
0x117e   :  { %v1375_v29 = vadd.f32 %v2796_v46, %v1374_v5  ;;  %v1478_v30 = vrot.slane %v1473_v28, 4  ;;  %v2266_v31 = vpop.f32.mrb[13].mxu1  ;;  %v2277_v33 = vpop.f32.mrb[13].mxu0 }
0x1180   :  { %2586 = vtanh.f32 %v1375_v29  ;;  %v1480_v10 = vadd.f32 %v1478_v30, %v2746_v13  ;;  %v1951_v15 = vmul.f32 -1.442695, %v1375_v29 }
0x1182   :  { %2588 = vtanh.f32 %v1480_v10  ;;  %v1953_v38 = vmul.f32 -1.442695, %v1480_v10 }
0x1183   :  { %2590 = vpow2.f32 %v1951_v15 }
0x1184   :  { %2592 = vpow2.f32 %v1953_v38 }
0x118a   :  { %v2587_v35 = vpop.eup %2586 }
0x118b   :  { %1387 = vrot.lane.b32.xlu0 %v2587_v35, %s2680_s30 }
0x118c   :  { %v2589_v36 = vpop.eup %2588 }
0x118d   :  { %1493 = vrot.lane.b32.xlu1 %v2589_v36, %s2680_s30  ;;  %v2591_v39 = vpop.eup %2590 }
0x118e   :  { %v2593_v40 = vpop.eup %2592  ;;  %v1381_v42 = vadd.f32 1.0, %v2591_v39 }
0x118f   :  { %v1484_v43 = vadd.f32 1.0, %v2593_v40 }
0x1190   :  { %2594 = vrcp.f32 %v1381_v42 }
0x1191   :  { %2596 = vrcp.f32 %v1484_v43 }
0x119a   :  { %v2595_v44 = vpop.eup %2594 }
0x119b   :  { %v2597_v48 = vpop.eup %2596  ;;  %v1385_v51 = vmul.f32 %v2595_v44, %v2956_v9 }
0x119c   :  { %v1491_v55 = vmul.f32 %v2597_v48, %v1489_v52 }
0x11fd   :  { %v1388_v45 = vpop.permute.xlu0 %1387 }
0x11fe   :  { %v1390_v47 = vmul.f32 %v2595_v44, %v1388_v45 }
0x11ff   :  { %v1494_v49 = vpop.permute.xlu1 %1493 }
0x1200   :  { %1392 = vrot.lane.b32.xlu0 %v1390_v47, %s2680_s30  ;;  %v1496_v50 = vmul.f32 %v2597_v48, %v1494_v49 }
0x1202   :  { %1498 = vrot.lane.b32.xlu1 %v1496_v50, %s2680_s30 }
0x1272   :  { %v1393_v53 = vpop.permute.xlu0 %1392 }
0x1273   :  { %v2994_v54 = vadd.f32 %v1393_v53, %v1385_v51 }
0x1274   :  { %v1499_v56 = vpop.permute.xlu1 %1498 }
0x1275   :  { %2598 = vtanh.f32 %v2994_v54  ;;  %v2997_v57 = vadd.f32 %v1499_v56, %v1491_v55 }
0x1277   :  { %2600 = vtanh.f32 %v2997_v57  ;;  %v1703_v28 = vrot.slane %v2997_v57, 6 }
0x127f   :  { %v2599_v58 = vpop.eup %2598 }
0x1280   :  { %1398 = vrot.lane.b32.xlu0 %v2599_v58, %s2680_s30 }
0x1281   :  { %v2601_v59 = vpop.eup %2600 }
0x1282   :  { %1504 = vrot.lane.b32.xlu1 %v2601_v59, %s2680_s30 }
0x12f2   :  { %v1399_v60 = vpop.permute.xlu0 %1398 }
0x12f3   :  { %v1401_v61 = vmul.f32 %v2595_v44, %v1399_v60 }
0x12f4   :  { %v1505_v63 = vpop.permute.xlu1 %1504 }
0x12f5   :  { %v1513_v62 = vrot.slane %v1401_v61, 4  ;;  %v1507_v2 = vmul.f32 %v2597_v48, %v1505_v63  ;;  %v43_v61 = vld [vmem:[#allocation2 + $0x70] sm:$0xff] }
0x12f7   :  { %1514 = vrot.lane.b32.xlu1 %v1513_v62, %s2682_s7  ;;  %1509 = vrot.lane.b32.xlu0 %v1507_v2, %s2681_s4  ;;  %v1616_v3 = vrot.slane %v1507_v2, 4  ;;  %v44_v62 = vld [vmem:[#allocation2 + $0x78] sm:$0xff]  ;;  %v45_v2 = vld [vmem:[#allocation2 + $0x80] sm:$0xff] }
0x12fb   :  { %1617 = vrot.lane.b32.xlu0 %v1616_v3, %s2681_s4  ;;  %v2486_v3 = vpack.c.bf16 %v45_v2, %v44_v62 }
0x1369   :  { %v1515_v4 = vpop.permute.xlu1 %1514  ;;  %v1510_v6 = vpop.permute.xlu0 %1509 }
0x136a   :  { %v1517_v7 = vsel %vm137_vm2, %v1510_v6, %v1515_v4 }
0x136b   :  { %v1519_v8 = vrot.slane %v1517_v7, 4 }
0x136d   :  { %v1618_v9 = vpop.permute.xlu0 %1617  ;;  %2295 = vmatmul.mubr.msk.f32.vlgmr.msra.gmra.mrb[14].mxu0 %vm245_vm3, %v1519_v8 }
0x136e   :  { %2306 = vmatmul.mubr.msk.f32.vlgmr.msra.gmra.mrb[14].mxu1 %vm137_vm2, %v1618_v9  ;;  %2335 = vmatprep.mubr.msk.f32.mxu0 %vm2678_vm0, %v2679_v1  ;;  %v1960_v9 = vld [vmem:[%s3057_s2 + $0x2] ss:$0 sm:$0xff] }
0x136f   :  { %2472 = vmatpush3.bf16.msra.mxu1 %v2756_v32  ;;  %2324 = vmatprep.mubr.msk.f32.mxu1 %vm2678_vm0, %v2679_v1 }
0x1370   :  { %2473 = vmatprep.subr.bf16.mxu1 %v2677_v0 }
0x1373   :  { %2475 = vmatpush3.bf16.msra.mxu1 %v2759_v34 }
0x1374   :  { %2476 = vmatprep.subr.bf16.mxu1 %v2677_v0 }
0x1377   :  { %2478 = vmatpush3.bf16.msra.mxu1 %v2763_v37 }
0x1378   :  { %2479 = vmatprep.subr.bf16.mxu1 %v2677_v0 }
0x137b   :  { %2481 = vmatpush3.bf16.msra.mxu1 %v2768_v41 }
0x1440   :  { %v1588_v11 = vpop.f32.mrb[14].mxu0 }
0x1441   :  { %v1589_v12 = vadd.f32 %v2796_v46, %v1588_v11  ;;  %v2296_v14 = vpop.f32.mrb[15].mxu0  ;;  %v1687_v32 = vpop.f32.mrb[14].mxu1 }
0x1442   :  { %v1692_v16 = vrot.slane %v1687_v32, 2  ;;  %v2307_v17 = vpop.f32.mrb[15].mxu1 }
0x1443   :  { %2602 = vtanh.f32 %v1589_v12  ;;  %v1955_v37 = vmul.f32 -1.442695, %v1589_v12 }
0x1444   :  { %v1694_v1 = vadd.f32 %v1692_v16, %v2746_v13 }
0x1446   :  { %2604 = vtanh.f32 %v1694_v1  ;;  %v1957_v19 = vmul.f32 -1.442695, %v1694_v1 }
0x1447   :  { %2606 = vpow2.f32 %v1955_v37 }
0x1448   :  { %2608 = vpow2.f32 %v1957_v19 }
0x144d   :  { %v2603_v34 = vpop.eup %2602 }
0x144e   :  { %1601 = vrot.lane.b32.xlu1 %v2603_v34, %s2680_s30 }
0x1450   :  { %v2605_v18 = vpop.eup %2604 }
0x1451   :  { %1707 = vrot.lane.b32.xlu0 %v2605_v18, %s2680_s30  ;;  %v2607_v41 = vpop.eup %2606 }
0x1452   :  { %v2609_v20 = vpop.eup %2608  ;;  %v1595_v21 = vadd.f32 1.0, %v2607_v41 }
0x1453   :  { %v1698_v22 = vadd.f32 1.0, %v2609_v20 }
0x1454   :  { %2610 = vrcp.f32 %v1595_v21 }
0x1455   :  { %2612 = vrcp.f32 %v1698_v22 }
0x145e   :  { %v2611_v23 = vpop.eup %2610 }
0x145f   :  { %v2613_v25 = vpop.eup %2612  ;;  %v1599_v5 = vmul.f32 %v2611_v23, %v2994_v54 }
0x1460   :  { %v1705_v31 = vmul.f32 %v2613_v25, %v1703_v28 }
0x14c0   :  { %v1602_v24 = vpop.permute.xlu1 %1601 }
0x14c1   :  { %v1604_v13 = vmul.f32 %v2611_v23, %v1602_v24 }
0x14c3   :  { %v1708_v26 = vpop.permute.xlu0 %1707  ;;  %1606 = vrot.lane.b32.xlu1 %v1604_v13, %s2680_s30 }
0x14c4   :  { %v1710_v27 = vmul.f32 %v2613_v25, %v1708_v26 }
0x14c6   :  { %1712 = vrot.lane.b32.xlu0 %v1710_v27, %s2680_s30 }
0x1535   :  { %v1607_v29 = vpop.permute.xlu1 %1606 }
0x1536   :  { %v1609_v30 = vadd.f32 %v1607_v29, %v1599_v5 }
0x1538   :  { %2614 = vtanh.f32 %v1609_v30  ;;  %v1713_v33 = vpop.permute.xlu0 %1712 }
0x1539   :  { %v1715_v10 = vadd.f32 %v1713_v33, %v1705_v31 }
0x153b   :  { %2616 = vtanh.f32 %v1715_v10 }
0x1542   :  { %v2615_v35 = vpop.eup %2614 }
0x1543   :  { %1612 = vrot.lane.b32.xlu1 %v2615_v35, %s2680_s30 }
0x1545   :  { %v2617_v36 = vpop.eup %2616 }
0x1546   :  { %1718 = vrot.lane.b32.xlu0 %v2617_v36, %s2680_s30 }
0x15b5   :  { %v1613_v15 = vpop.permute.xlu1 %1612 }
0x15b6   :  { %v1615_v38 = vmul.f32 %v2611_v23, %v1613_v15 }
0x15b8   :  { %v1727_v39 = vrot.slane %v1615_v38, 2  ;;  %v1719_v40 = vpop.permute.xlu0 %1718 }
0x15b9   :  { %v1721_v42 = vmul.f32 %v2613_v25, %v1719_v40 }
0x15ba   :  { %1728 = vrot.lane.b32.xlu0 %v1727_v39, %s2682_s7 }
0x15bb   :  { %1723 = vrot.lane.b32.xlu1 %v1721_v42, %s2681_s4 }
0x162c   :  { %v1729_v43 = vpop.permute.xlu0 %1728 }
0x162d   :  { %v1724_v44 = vpop.permute.xlu1 %1723 }
0x162e   :  { %v1731_v45 = vsel %vm137_vm2, %v1724_v44, %v1729_v43 }
0x162f   :  { %v1733_v47 = vrot.slane %v1731_v45, 6 }
0x1631   :  { %2325 = vmatmul.mubr.msk.f32.vlgmr.msra.gmra.mrb[16].mxu1 %vm245_vm3, %v1733_v47 }
0x1704   :  { %v1802_v48 = vpop.f32.mrb[16].mxu1 }
0x1705   :  { %v1803_v49 = vadd.f32 %v2796_v46, %v1802_v48  ;;  %v2326_v50 = vpop.f32.mrb[17].mxu1  ;;  %v42_v46 = vld [vmem:[#allocation2 + $0x68] sm:$0xff] }
0x1706   :  { %v2483_v63 = vpack.c.bf16 %v43_v61, %v42_v46 }
0x1707   :  { %2618 = vtanh.f32 %v1803_v49  ;;  %v1959_v52 = vmul.f32 -1.442695, %v1803_v49 }
0x1708   :  { %2484 = vmatpush3.bf16.msra.mxu0 %v2483_v63 }
0x1709   :  { %2620 = vpow2.f32 %v1959_v52  ;;  %2485 = vmatprep.subr.bf16.mxu0 %v2677_v0 }
0x170c   :  { %2487 = vmatpush3.bf16.msra.mxu0 %v2486_v3 }
0x1711   :  { %v2619_v51 = vpop.eup %2618 }
0x1712   :  { %1815 = vrot.lane.b32.xlu1 %v2619_v51, %s2680_s30 }
0x1713   :  { %v2621_v53 = vpop.eup %2620 }
0x1714   :  { %v1809_v54 = vadd.f32 1.0, %v2621_v53 }
0x1716   :  { %2622 = vrcp.f32 %v1809_v54 }
0x1720   :  { %v2623_v55 = vpop.eup %2622 }
0x1721   :  { %v1813_v58 = vmul.f32 %v2623_v55, %v1609_v30 }
0x1784   :  { %v1816_v56 = vpop.permute.xlu1 %1815 }
0x1785   :  { %v1818_v57 = vmul.f32 %v2623_v55, %v1816_v56 }
0x1787   :  { %1820 = vrot.lane.b32.xlu0 %v1818_v57, %s2680_s30 }
0x17f9   :  { %v1821_v59 = vpop.permute.xlu0 %1820 }
0x17fa   :  { %v1823_v60 = vadd.f32 %v1821_v59, %v1813_v58 }
0x17fc   :  { %2624 = vtanh.f32 %v1823_v60 }
0x1806   :  { %v2625_v4 = vpop.eup %2624 }
0x1807   :  { %1826 = vrot.lane.b32.xlu1 %v2625_v4, %s2680_s30 }
0x1879   :  { %v1827_v6 = vpop.permute.xlu1 %1826 }
0x187a   :  { %v1829_v7 = vmul.f32 %v2623_v55, %v1827_v6 }
0x187c   :  { %1835 = vrot.lane.b32.xlu0 %v1829_v7, %s2681_s4 }
0x18ee   :  { %v1836_v8 = vpop.permute.xlu0 %1835 }
0x18ef   :  { %2336 = vmatmul.mubr.msk.f32.vlgmr.msra.gmra.mrb[16].mxu0 %vm137_vm2, %v1836_v8 }
0x19c2   :  { %v1905_v11 = vpop.f32.mrb[16].mxu0 }
0x19c3   :  { %v1906_v12 = vadd.f32 %v1960_v9, %v1905_v11  ;;  %v2337_v0 = vpop.f32.mrb[17].mxu0 }
0x19c5   :  { %1909 = vst [vmem:[#allocation5] sm:$0x3] %v1906_v12 }
0x19c6   :  { %2659 = shalt.err (!%p2656_p12)
}
0x19c7   :  { %s2660_s15 = scalar_lea.hbm %s3058_s3, 32 }
0x19c8   :  { %p2661_p13 = scmp.ne.s32.totalorder %s3058_s3, %s2660_s15  ;;  %p2664_p0 = scmp.lt.u32.totalorder %s2660_s15, %s3058_s3 }
0x19ca   :  { %p2666_p1 = pnand %p2664_p0, %p2661_p13 }
0x19cc   :  { %2669 = shalt.err (!%p2666_p1)
}
0x19cd   :  { %1919 = dma.vmem_to_hbm [thread:$0]  %s1917_s11, 32, %s3058_s3, [#allocation4]  }
0x19ce   :  { %2672 = dma.done.wait [#allocation4], 32  }
0x19cf   :  { %2673 = vsyncadd [#allocation4], 4294967264 }
0x19d0   :  { %1923 = vsyncpa [#allocation3], 1 }
0x19d1   :  { %1924 = vsyncpa [#allocation4], 1 }

</bundles_post_ra>
